<compile_context>
chip_gen: v6e
topology: v6e:2x2x1
jax: 0.10.0
libtpu: 0.0.40
codegen_flags: <defaults>
</compile_context>

<pallas_src>
import functools

import jax
import jax.numpy as jnp
from jax import lax
from jax.experimental import pallas as pl
from jax.experimental.pallas import tpu as pltpu


def _round_up(x, m):
    return (x + m - 1) // m * m


# ----------------------------------------------------------------------------
# Fused kernel: one (batch element, row strip) per grid step.
# ----------------------------------------------------------------------------
def _down_conv_kernel(p1_ref, w1_ref, b1_ref, w2_ref, b2_ref, o_ref, y1_ref,
                      *, K, TS, Wc, apply_relu2):
    Hs1, W1, C1p = p1_ref.shape          # strip rows (incl. halo), padded width, padded K*K*Cin
    Cp = w1_ref.shape[1]                 # lane-padded output channels

    # ---- layer 1: one lane-dense MXU matmul (BN scale folded into w1) ------
    a1 = p1_ref[...].reshape(Hs1 * W1, C1p)          # free reshape: W1 % 8 == 0, C1p % 128 == 0
    z1 = jnp.dot(a1, w1_ref[...], preferred_element_type=jnp.float32)
    y1 = jnp.maximum(z1 + b1_ref[...], 0.0)          # fused (conv-bias+BN) shift + ReLU
    # Intermediate activation stays in VMEM, stored in bf16.
    y1_ref[...] = y1.astype(jnp.bfloat16).reshape(Hs1, W1, Cp)

    # ---- layer 2: K*K accumulated matmuls, NO materialized im2col ----------
    acc = jnp.zeros((TS * Wc, Cp), jnp.float32)
    for dw in range(K):
        # one sublane shift per dw (3 copies, not 9); dh offsets are free views
        y1_dw = y1_ref[:, dw:dw + Wc, :]             # (Hs1, Wc, Cp) bf16
        for dh in range(K):
            a2 = y1_dw[dh:dh + TS].reshape(TS * Wc, Cp)   # free: Wc % 8 == 0
            acc = acc + jnp.dot(a2, w2_ref[dh * K + dw],
                                preferred_element_type=jnp.float32)

    y2 = acc + b2_ref[...]                           # fused conv-bias + BN shift
    if apply_relu2:
        y2 = jnp.maximum(y2, 0.0)
    o_ref[...] = y2.astype(o_ref.dtype)              # lane-dense bf16 store


# ----------------------------------------------------------------------------
# DownConv forward (NCHW in / NCHW out)
# ----------------------------------------------------------------------------
def down_conv_forward(x_nchw, params, *, last_layer=False, strip_rows=32):
    x = jnp.transpose(x_nchw, (0, 2, 3, 1)).astype(jnp.float32)   # -> NHWC
    N, Hi, Wi, Cin = x.shape
    w1, w2 = params["w1"], params["w2"]
    K = w1.shape[0]
    Cout = w1.shape[-1]
    pad = K // 2
    Ho2, Wo2 = Hi - (K - 1), Wi - (K - 1)            # layer-2 VALID output size

    Cp = _round_up(Cout, 128)                        # lane-dense output channels
    C1p = _round_up(K * K * Cin, 128)                # lane-dense layer-1 patch channels
    Wc = _round_up(Wo2, 8)                           # layer-2 compute width (mult of 8)
    W1 = _round_up(Wc + K - 1, 8)                    # y1 / patch width incl. halo cols
    TS = max(1, min(strip_rows, Ho2))                # layer-2 output rows per strip
    S = pl.cdiv(Ho2, TS)                             # number of row strips
    Hs1 = TS + K - 1                                 # strip height incl. halo rows

    # --- layer-1 im2col precomputed lane-dense in the wrapper (Cin is tiny) --
    xpad = jnp.pad(x, ((0, 0), (pad, pad), (pad, pad), (0, 0)))
    cols = [xpad[:, dh:dh + Hi, dw:dw + Wi, :]
            for dh in range(K) for dw in range(K)]
    p1 = jnp.concatenate(cols, axis=-1)              # (N, Hi, Wi, K*K*Cin), f32
    p1 = jnp.pad(p1, ((0, 0), (0, 0), (0, W1 - Wi), (0, C1p - K * K * Cin)))
    p1 = p1.astype(jnp.bfloat16)                     # bf16 before expansion / DMA

    # --- row strips with a (K-1)-row halo (duplicated in HBM: ~(K-1)/TS) -----
    row_idx = jnp.clip(jnp.arange(S)[:, None] * TS + jnp.arange(Hs1)[None, :],
                       0, Hi - 1)                    # (S, Hs1)
    p1_strips = p1[:, row_idx]                       # (N, S, Hs1, W1, C1p) bf16

    # --- weights: fold BN scale into bf16 weight columns ---------------------
    s1 = params["scale1"].reshape(-1).astype(jnp.float32)
    s2 = params["scale2"].reshape(-1).astype(jnp.float32)
    w1f = (w1.astype(jnp.float32) * s1).reshape(K * K * Cin, Cout)
    w2f = (w2.astype(jnp.float32) * s2).reshape(K * K, Cout, Cout)
    w1_2d = jnp.zeros((C1p, Cp), jnp.bfloat16).at[:K * K * Cin, :Cout].set(
        w1f.astype(jnp.bfloat16))
    w2_blk = jnp.zeros((K * K, Cp, Cp), jnp.bfloat16).at[:, :Cout, :Cout].set(
        w2f.astype(jnp.bfloat16))

    def _pad_vec(v):
        return jnp.zeros((1, Cp), jnp.float32).at[:, :Cout].set(
            v.reshape(1, Cout).astype(jnp.float32))

    b1, b2 = _pad_vec(params["shift1"]), _pad_vec(params["shift2"])

    kernel = functools.partial(_down_conv_kernel, K=K, TS=TS, Wc=Wc,
                               apply_relu2=not last_layer)

    # --- cost estimate & explicit VMEM budget ---------------------------------
    flops = 2 * N * S * (Hs1 * W1 * C1p * Cp + TS * Wc * K * K * Cp * Cp)
    bytes_accessed = (p1_strips.size * 2 + w1_2d.size * 2 + w2_blk.size * 2
                      + (b1.size + b2.size) * 4 + N * S * TS * Wc * Cp * 2)
    blk_in = Hs1 * W1 * C1p * 2
    blk_out = TS * Wc * Cp * 2
    weights_b = C1p * Cp * 2 + K * K * Cp * Cp * 2 + 2 * Cp * 4
    vmem_need = (2 * (blk_in + blk_out + weights_b)      # double-buffered blocks
                 + Hs1 * W1 * Cp * 2                     # bf16 y1 scratch
                 + TS * Wc * Cp * 4)                     # f32 accumulator
    vmem_limit = int(min(max(2 * vmem_need, 32 * 1024 * 1024), 64 * 1024 * 1024))

    out = pl.pallas_call(
        kernel,
        out_shape=jax.ShapeDtypeStruct((N, S, TS * Wc, Cp), jnp.bfloat16),
        grid=(N, S),
        in_specs=[
            # one (batch, strip) tile of layer-1 patches per grid step
            pl.BlockSpec((None, None, Hs1, W1, C1p), lambda n, s: (n, s, 0, 0, 0)),
            # weights / shifts stay resident (constant index maps)
            pl.BlockSpec((C1p, Cp), lambda n, s: (0, 0)),
            pl.BlockSpec((1, Cp), lambda n, s: (0, 0)),
            pl.BlockSpec((K * K, Cp, Cp), lambda n, s: (0, 0, 0)),
            pl.BlockSpec((1, Cp), lambda n, s: (0, 0)),
        ],
        out_specs=pl.BlockSpec((None, None, TS * Wc, Cp), lambda n, s: (n, s, 0, 0)),
        scratch_shapes=[pltpu.VMEM((Hs1, W1, Cp), jnp.bfloat16)],
        compiler_params=pltpu.CompilerParams(
            dimension_semantics=("parallel", "parallel"),
            vmem_limit_bytes=vmem_limit),
        cost_estimate=pl.CostEstimate(flops=int(flops), transcendentals=0,
                                      bytes_accessed=int(bytes_accessed)),
    )(p1_strips, w1_2d, b1, w2_blk, b2)

    # un-pad rows / cols / channels, restore spatial layout, back to NCHW
    y = out.reshape(N, S * TS, Wc, Cp)[:, :Ho2, :Wo2, :Cout].astype(jnp.float32)
    return jnp.transpose(y, (0, 3, 1, 2)).astype(x_nchw.dtype)


# ----------------------------------------------------------------------------
# Deterministic parameter construction (synthetic; folds conv bias + BN)
# ----------------------------------------------------------------------------
def make_params(key, in_channels, out_channels, k=3, eps=1e-5):
    keys = jax.random.split(key, 7)

    def conv_bn(kw, kb, kg, kbeta, km, kv, cin, cout):
        w = jax.random.normal(kw, (k, k, cin, cout), jnp.float32) * 0.1   # HWIO
        b = jax.random.normal(kb, (cout,), jnp.float32) * 0.1
        gamma = 1.0 + 0.1 * jax.random.normal(kg, (cout,), jnp.float32)
        beta = 0.1 * jax.random.normal(kbeta, (cout,), jnp.float32)
        mean = 0.1 * jax.random.normal(km, (cout,), jnp.float32)
        var = jnp.abs(jax.random.normal(kv, (cout,), jnp.float32)) + 0.5
        s = gamma / jnp.sqrt(var + eps)                    # fused scale
        sh = s * (b - mean) + beta                         # fused shift
        return w, s.reshape(1, cout), sh.reshape(1, cout)

    w1, s1, sh1 = conv_bn(*keys[0:6], in_channels, out_channels)
    w2, s2, sh2 = conv_bn(*jax.random.split(keys[6], 6), out_channels, out_channels)
    return {"w1": w1, "scale1": s1, "shift1": sh1,
            "w2": w2, "scale2": s2, "shift2": sh2}


# ----------------------------------------------------------------------------
# Plain-JAX reference (f32) for correctness check
# ----------------------------------------------------------------------------
def reference_forward(x_nchw, params, *, last_layer=False):
    x = jnp.transpose(x_nchw, (0, 2, 3, 1))
    dn = lax.conv_dimension_numbers(x.shape, params["w1"].shape,
                                    ("NHWC", "HWIO", "NHWC"))
    y = lax.conv_general_dilated(x, params["w1"], (1, 1), "SAME",
                                 dimension_numbers=dn)
    y = jnp.maximum(y * params["scale1"] + params["shift1"], 0.0)
    y = lax.conv_general_dilated(y, params["w2"], (1, 1), "VALID",
                                 dimension_numbers=dn)
    y = y * params["scale2"] + params["shift2"]
    if not last_layer:
        y = jnp.maximum(y, 0.0)
    return jnp.transpose(y, (0, 3, 1, 2))


if __name__ == "__main__":
    key = jax.random.PRNGKey(0)
    k_x, k_p = jax.random.split(key)

    N, Cin, Cout, H, W = 2, 4, 8, 16, 16
    x = jax.random.normal(k_x, (N, Cin, H, W), jnp.float32)
    params = make_params(k_p, Cin, Cout)

    # strip_rows=8 exercises the multi-strip grid (S=2) even at this toy size.
    out = down_conv_forward(x, params, last_layer=False, strip_rows=8)
    out = jax.block_until_ready(out)
    ref = jax.block_until_ready(reference_forward(x, params, last_layer=False))
    assert out.shape == (N, Cout, H - 2, W - 2), out.shape
    # bf16 MXU operands / bf16 intermediates vs f32 reference -> loose tolerance.
    assert jnp.allclose(out, ref, atol=5e-2, rtol=5e-2), float(
        jnp.max(jnp.abs(out - ref)))

    # last_layer=True branch (no final ReLU)
    out2 = jax.block_until_ready(
        down_conv_forward(x, params, last_layer=True, strip_rows=8))
    ref2 = jax.block_until_ready(reference_forward(x, params, last_layer=True))
    assert jnp.allclose(out2, ref2, atol=5e-2, rtol=5e-2), float(
        jnp.max(jnp.abs(out2 - ref2)))

    print("KERNEL_OK")
</pallas_src>

<mosaic_0001>
module attributes {stable_mosaic.version = 11 : i64} {
  func.func @_down_conv_kernel(%arg0: i32, %arg1: i32, %arg2: memref<1x1x10x24x128xbf16, #tpu.memory_space<vmem>>, %arg3: memref<128x128xbf16, #tpu.memory_space<vmem>>, %arg4: memref<1x128xf32, #tpu.memory_space<vmem>>, %arg5: memref<9x128x128xbf16, #tpu.memory_space<vmem>>, %arg6: memref<1x128xf32, #tpu.memory_space<vmem>>, %arg7: memref<1x1x128x128xbf16, #tpu.memory_space<vmem>>, %arg8: memref<10x24x128xbf16, #tpu.memory_space<vmem>>) attributes {dimension_semantics = [#tpu.dimension_semantics<parallel>, #tpu.dimension_semantics<parallel>], iteration_bounds = array<i64: 2, 2>, scalar_prefetch = 0 : i64, scratch_operands = 1 : i64, tpu.core_type = #tpu.core_type<tc>, window_params = [{transform_indices = @transform_0, window_bounds = array<i64: 1, 1, 10, 24, 128>}, {pipeline_mode = #tpu.pipeline_mode<synchronous>, transform_indices = @transform_1, window_bounds = array<i64: 128, 128>}, {pipeline_mode = #tpu.pipeline_mode<synchronous>, transform_indices = @transform_2, window_bounds = array<i64: 1, 128>}, {pipeline_mode = #tpu.pipeline_mode<synchronous>, transform_indices = @transform_3, window_bounds = array<i64: 9, 128, 128>}, {pipeline_mode = #tpu.pipeline_mode<synchronous>, transform_indices = @transform_4, window_bounds = array<i64: 1, 128>}, {transform_indices = @transform_5, window_bounds = array<i64: 1, 1, 128, 128>}]} {
    %c0 = arith.constant 0 : index
    %c0_0 = arith.constant 0 : index
    %c0_1 = arith.constant 0 : index
    %c0_2 = arith.constant 0 : index
    %c0_3 = arith.constant 0 : index
    %0 = vector.load %arg2[%c0, %c0_0, %c0_1, %c0_2, %c0_3] : memref<1x1x10x24x128xbf16, #tpu.memory_space<vmem>>, vector<1x1x10x24x128xbf16>
    %1 = vector.shape_cast %0 : vector<1x1x10x24x128xbf16> to vector<10x24x128xbf16>
    %2 = vector.shape_cast %1 : vector<10x24x128xbf16> to vector<240x128xbf16>
    %c0_4 = arith.constant 0 : index
    %c0_5 = arith.constant 0 : index
    %3 = vector.load %arg3[%c0_4, %c0_5] : memref<128x128xbf16, #tpu.memory_space<vmem>>, vector<128x128xbf16>
    %cst = arith.constant dense<0.000000e+00> : vector<240x128xf32>
    %4 = tpu.matmul %2, %3, %cst {dimension_numbers = #tpu.dot_dimension_numbers<[1], [0], [0], [1], [0, 0, 1, 1], [], []>} : vector<240x128xbf16>, vector<128x128xbf16>, vector<240x128xf32> -> vector<240x128xf32>
    %c0_6 = arith.constant 0 : index
    %c0_7 = arith.constant 0 : index
    %5 = vector.load %arg4[%c0_6, %c0_7] : memref<1x128xf32, #tpu.memory_space<vmem>>, vector<1x128xf32>
    %6 = vector.broadcast %5 : vector<1x128xf32> to vector<240x128xf32>
    %7 = arith.addf %4, %6 : vector<240x128xf32>
    %cst_8 = arith.constant 0.000000e+00 : f32
    %8 = vector.broadcast %cst_8 : f32 to vector<240x128xf32>
    %9 = arith.maximumf %7, %8 : vector<240x128xf32>
    %10 = arith.truncf %9 : vector<240x128xf32> to vector<240x128xbf16>
    %11 = vector.shape_cast %10 : vector<240x128xbf16> to vector<10x24x128xbf16>
    %c0_9 = arith.constant 0 : index
    %c0_10 = arith.constant 0 : index
    %c0_11 = arith.constant 0 : index
    %12 = vector.load %arg8[%c0_9, %c0_10, %c0_11] : memref<10x24x128xbf16, #tpu.memory_space<vmem>>, vector<10x24x128xbf16>
    tpu.vector_store %arg8[%c0_9, %c0_10, %c0_11], %11 {strides = array<i32>} : memref<10x24x128xbf16, #tpu.memory_space<vmem>>, vector<10x24x128xbf16>,
    %cst_12 = arith.constant 0.000000e+00 : f32
    %13 = vector.broadcast %cst_12 : f32 to vector<128x128xf32>
    %c0_13 = arith.constant 0 : index
    %c0_14 = arith.constant 0 : index
    %c0_15 = arith.constant 0 : index
    %14 = vector.load %arg8[%c0_13, %c0_14, %c0_15] : memref<10x24x128xbf16, #tpu.memory_space<vmem>>, vector<10x16x128xbf16>
    %15 = vector.extract_strided_slice %14 {offsets = [0, 0, 0], sizes = [8, 16, 128], strides = [1, 1, 1]} : vector<10x16x128xbf16> to vector<8x16x128xbf16>
    %16 = vector.shape_cast %15 : vector<8x16x128xbf16> to vector<128x128xbf16>
    %c0_16 = arith.constant 0 : index
    %c0_17 = arith.constant 0 : index
    %c0_18 = arith.constant 0 : index
    %17 = vector.load %arg5[%c0_16, %c0_17, %c0_18] : memref<9x128x128xbf16, #tpu.memory_space<vmem>>, vector<1x128x128xbf16>
    %18 = vector.shape_cast %17 : vector<1x128x128xbf16> to vector<128x128xbf16>
    %cst_19 = arith.constant dense<0.000000e+00> : vector<128x128xf32>
    %19 = tpu.matmul %16, %18, %cst_19 {dimension_numbers = #tpu.dot_dimension_numbers<[1], [0], [0], [1], [0, 0, 1, 1], [], []>} : vector<128x128xbf16>, vector<128x128xbf16>, vector<128x128xf32> -> vector<128x128xf32>
    %20 = arith.addf %13, %19 : vector<128x128xf32>
    %21 = vector.extract_strided_slice %14 {offsets = [1, 0, 0], sizes = [8, 16, 128], strides = [1, 1, 1]} : vector<10x16x128xbf16> to vector<8x16x128xbf16>
    %22 = vector.shape_cast %21 : vector<8x16x128xbf16> to vector<128x128xbf16>
    %c3 = arith.constant 3 : index
    %c0_20 = arith.constant 0 : index
    %c0_21 = arith.constant 0 : index
    %23 = vector.load %arg5[%c3, %c0_20, %c0_21] : memref<9x128x128xbf16, #tpu.memory_space<vmem>>, vector<1x128x128xbf16>
    %24 = vector.shape_cast %23 : vector<1x128x128xbf16> to vector<128x128xbf16>
    %cst_22 = arith.constant dense<0.000000e+00> : vector<128x128xf32>
    %25 = tpu.matmul %22, %24, %cst_22 {dimension_numbers = #tpu.dot_dimension_numbers<[1], [0], [0], [1], [0, 0, 1, 1], [], []>} : vector<128x128xbf16>, vector<128x128xbf16>, vector<128x128xf32> -> vector<128x128xf32>
    %26 = arith.addf %20, %25 : vector<128x128xf32>
    %27 = vector.extract_strided_slice %14 {offsets = [2, 0, 0], sizes = [8, 16, 128], strides = [1, 1, 1]} : vector<10x16x128xbf16> to vector<8x16x128xbf16>
    %28 = vector.shape_cast %27 : vector<8x16x128xbf16> to vector<128x128xbf16>
    %c6 = arith.constant 6 : index
    %c0_23 = arith.constant 0 : index
    %c0_24 = arith.constant 0 : index
    %29 = vector.load %arg5[%c6, %c0_23, %c0_24] : memref<9x128x128xbf16, #tpu.memory_space<vmem>>, vector<1x128x128xbf16>
    %30 = vector.shape_cast %29 : vector<1x128x128xbf16> to vector<128x128xbf16>
    %cst_25 = arith.constant dense<0.000000e+00> : vector<128x128xf32>
    %31 = tpu.matmul %28, %30, %cst_25 {dimension_numbers = #tpu.dot_dimension_numbers<[1], [0], [0], [1], [0, 0, 1, 1], [], []>} : vector<128x128xbf16>, vector<128x128xbf16>, vector<128x128xf32> -> vector<128x128xf32>
    %32 = arith.addf %26, %31 : vector<128x128xf32>
    %c0_26 = arith.constant 0 : index
    %c1 = arith.constant 1 : index
    %c0_27 = arith.constant 0 : index
    %33 = vector.load %arg8[%c0_26, %c1, %c0_27] : memref<10x24x128xbf16, #tpu.memory_space<vmem>>, vector<10x16x128xbf16>
    %34 = vector.extract_strided_slice %33 {offsets = [0, 0, 0], sizes = [8, 16, 128], strides = [1, 1, 1]} : vector<10x16x128xbf16> to vector<8x16x128xbf16>
    %35 = vector.shape_cast %34 : vector<8x16x128xbf16> to vector<128x128xbf16>
    %c1_28 = arith.constant 1 : index
    %c0_29 = arith.constant 0 : index
    %c0_30 = arith.constant 0 : index
    %36 = vector.load %arg5[%c1_28, %c0_29, %c0_30] : memref<9x128x128xbf16, #tpu.memory_space<vmem>>, vector<1x128x128xbf16>
    %37 = vector.shape_cast %36 : vector<1x128x128xbf16> to vector<128x128xbf16>
    %cst_31 = arith.constant dense<0.000000e+00> : vector<128x128xf32>
    %38 = tpu.matmul %35, %37, %cst_31 {dimension_numbers = #tpu.dot_dimension_numbers<[1], [0], [0], [1], [0, 0, 1, 1], [], []>} : vector<128x128xbf16>, vector<128x128xbf16>, vector<128x128xf32> -> vector<128x128xf32>
    %39 = arith.addf %32, %38 : vector<128x128xf32>
    %40 = vector.extract_strided_slice %33 {offsets = [1, 0, 0], sizes = [8, 16, 128], strides = [1, 1, 1]} : vector<10x16x128xbf16> to vector<8x16x128xbf16>
    %41 = vector.shape_cast %40 : vector<8x16x128xbf16> to vector<128x128xbf16>
    %c4 = arith.constant 4 : index
    %c0_32 = arith.constant 0 : index
    %c0_33 = arith.constant 0 : index
    %42 = vector.load %arg5[%c4, %c0_32, %c0_33] : memref<9x128x128xbf16, #tpu.memory_space<vmem>>, vector<1x128x128xbf16>
    %43 = vector.shape_cast %42 : vector<1x128x128xbf16> to vector<128x128xbf16>
    %cst_34 = arith.constant dense<0.000000e+00> : vector<128x128xf32>
    %44 = tpu.matmul %41, %43, %cst_34 {dimension_numbers = #tpu.dot_dimension_numbers<[1], [0], [0], [1], [0, 0, 1, 1], [], []>} : vector<128x128xbf16>, vector<128x128xbf16>, vector<128x128xf32> -> vector<128x128xf32>
    %45 = arith.addf %39, %44 : vector<128x128xf32>
    %46 = vector.extract_strided_slice %33 {offsets = [2, 0, 0], sizes = [8, 16, 128], strides = [1, 1, 1]} : vector<10x16x128xbf16> to vector<8x16x128xbf16>
    %47 = vector.shape_cast %46 : vector<8x16x128xbf16> to vector<128x128xbf16>
    %c7 = arith.constant 7 : index
    %c0_35 = arith.constant 0 : index
    %c0_36 = arith.constant 0 : index
    %48 = vector.load %arg5[%c7, %c0_35, %c0_36] : memref<9x128x128xbf16, #tpu.memory_space<vmem>>, vector<1x128x128xbf16>
    %49 = vector.shape_cast %48 : vector<1x128x128xbf16> to vector<128x128xbf16>
    %cst_37 = arith.constant dense<0.000000e+00> : vector<128x128xf32>
    %50 = tpu.matmul %47, %49, %cst_37 {dimension_numbers = #tpu.dot_dimension_numbers<[1], [0], [0], [1], [0, 0, 1, 1], [], []>} : vector<128x128xbf16>, vector<128x128xbf16>, vector<128x128xf32> -> vector<128x128xf32>
    %51 = arith.addf %45, %50 : vector<128x128xf32>
    %c0_38 = arith.constant 0 : index
    %c2 = arith.constant 2 : index
    %c0_39 = arith.constant 0 : index
    %52 = vector.load %arg8[%c0_38, %c2, %c0_39] : memref<10x24x128xbf16, #tpu.memory_space<vmem>>, vector<10x16x128xbf16>
    %53 = vector.extract_strided_slice %52 {offsets = [0, 0, 0], sizes = [8, 16, 128], strides = [1, 1, 1]} : vector<10x16x128xbf16> to vector<8x16x128xbf16>
    %54 = vector.shape_cast %53 : vector<8x16x128xbf16> to vector<128x128xbf16>
    %c2_40 = arith.constant 2 : index
    %c0_41 = arith.constant 0 : index
    %c0_42 = arith.constant 0 : index
    %55 = vector.load %arg5[%c2_40, %c0_41, %c0_42] : memref<9x128x128xbf16, #tpu.memory_space<vmem>>, vector<1x128x128xbf16>
    %56 = vector.shape_cast %55 : vector<1x128x128xbf16> to vector<128x128xbf16>
    %cst_43 = arith.constant dense<0.000000e+00> : vector<128x128xf32>
    %57 = tpu.matmul %54, %56, %cst_43 {dimension_numbers = #tpu.dot_dimension_numbers<[1], [0], [0], [1], [0, 0, 1, 1], [], []>} : vector<128x128xbf16>, vector<128x128xbf16>, vector<128x128xf32> -> vector<128x128xf32>
    %58 = arith.addf %51, %57 : vector<128x128xf32>
    %59 = vector.extract_strided_slice %52 {offsets = [1, 0, 0], sizes = [8, 16, 128], strides = [1, 1, 1]} : vector<10x16x128xbf16> to vector<8x16x128xbf16>
    %60 = vector.shape_cast %59 : vector<8x16x128xbf16> to vector<128x128xbf16>
    %c5 = arith.constant 5 : index
    %c0_44 = arith.constant 0 : index
    %c0_45 = arith.constant 0 : index
    %61 = vector.load %arg5[%c5, %c0_44, %c0_45] : memref<9x128x128xbf16, #tpu.memory_space<vmem>>, vector<1x128x128xbf16>
    %62 = vector.shape_cast %61 : vector<1x128x128xbf16> to vector<128x128xbf16>
    %cst_46 = arith.constant dense<0.000000e+00> : vector<128x128xf32>
    %63 = tpu.matmul %60, %62, %cst_46 {dimension_numbers = #tpu.dot_dimension_numbers<[1], [0], [0], [1], [0, 0, 1, 1], [], []>} : vector<128x128xbf16>, vector<128x128xbf16>, vector<128x128xf32> -> vector<128x128xf32>
    %64 = arith.addf %58, %63 : vector<128x128xf32>
    %65 = vector.extract_strided_slice %52 {offsets = [2, 0, 0], sizes = [8, 16, 128], strides = [1, 1, 1]} : vector<10x16x128xbf16> to vector<8x16x128xbf16>
    %66 = vector.shape_cast %65 : vector<8x16x128xbf16> to vector<128x128xbf16>
    %c8 = arith.constant 8 : index
    %c0_47 = arith.constant 0 : index
    %c0_48 = arith.constant 0 : index
    %67 = vector.load %arg5[%c8, %c0_47, %c0_48] : memref<9x128x128xbf16, #tpu.memory_space<vmem>>, vector<1x128x128xbf16>
    %68 = vector.shape_cast %67 : vector<1x128x128xbf16> to vector<128x128xbf16>
    %cst_49 = arith.constant dense<0.000000e+00> : vector<128x128xf32>
    %69 = tpu.matmul %66, %68, %cst_49 {dimension_numbers = #tpu.dot_dimension_numbers<[1], [0], [0], [1], [0, 0, 1, 1], [], []>} : vector<128x128xbf16>, vector<128x128xbf16>, vector<128x128xf32> -> vector<128x128xf32>
    %70 = arith.addf %64, %69 : vector<128x128xf32>
    %c0_50 = arith.constant 0 : index
    %c0_51 = arith.constant 0 : index
    %71 = vector.load %arg6[%c0_50, %c0_51] : memref<1x128xf32, #tpu.memory_space<vmem>>, vector<1x128xf32>
    %72 = vector.broadcast %71 : vector<1x128xf32> to vector<128x128xf32>
    %73 = arith.addf %70, %72 : vector<128x128xf32>
    %cst_52 = arith.constant 0.000000e+00 : f32
    %74 = vector.broadcast %cst_52 : f32 to vector<128x128xf32>
    %75 = arith.maximumf %73, %74 : vector<128x128xf32>
    %76 = arith.truncf %75 : vector<128x128xf32> to vector<128x128xbf16>
    %c0_53 = arith.constant 0 : index
    %c0_54 = arith.constant 0 : index
    %c0_55 = arith.constant 0 : index
    %c0_56 = arith.constant 0 : index
    %77 = vector.load %arg7[%c0_53, %c0_54, %c0_55, %c0_56] : memref<1x1x128x128xbf16, #tpu.memory_space<vmem>>, vector<1x1x128x128xbf16>
    %78 = vector.shape_cast %77 : vector<1x1x128x128xbf16> to vector<128x128xbf16>
    %79 = vector.shape_cast %76 : vector<128x128xbf16> to vector<1x1x128x128xbf16>
    tpu.vector_store %arg7[%c0_53, %c0_54, %c0_55, %c0_56], %79 {strides = array<i32>} : memref<1x1x128x128xbf16, #tpu.memory_space<vmem>>, vector<1x1x128x128xbf16>,
    return
  }
  func.func @transform_0(%arg0: i32, %arg1: i32) -> (i32, i32, i32, i32, i32) {
    %c0_i32 = arith.constant 0 : i32
    %c0_i32_0 = arith.constant 0 : i32
    %c0_i32_1 = arith.constant 0 : i32
    %c0_i32_2 = arith.constant 0 : i32
    return %arg0, %arg1, %c0_i32, %c0_i32_0, %c0_i32_1 : i32, i32, i32, i32, i32
  }
  func.func @transform_1(%arg0: i32, %arg1: i32) -> (i32, i32) {
    %c0_i32 = arith.constant 0 : i32
    %c0_i32_0 = arith.constant 0 : i32
    %c0_i32_1 = arith.constant 0 : i32
    return %c0_i32, %c0_i32_0 : i32, i32
  }
  func.func @transform_2(%arg0: i32, %arg1: i32) -> (i32, i32) {
    %c0_i32 = arith.constant 0 : i32
    %c0_i32_0 = arith.constant 0 : i32
    %c0_i32_1 = arith.constant 0 : i32
    return %c0_i32, %c0_i32_0 : i32, i32
  }
  func.func @transform_3(%arg0: i32, %arg1: i32) -> (i32, i32, i32) {
    %c0_i32 = arith.constant 0 : i32
    %c0_i32_0 = arith.constant 0 : i32
    %c0_i32_1 = arith.constant 0 : i32
    %c0_i32_2 = arith.constant 0 : i32
    return %c0_i32, %c0_i32_0, %c0_i32_1 : i32, i32, i32
  }
  func.func @transform_4(%arg0: i32, %arg1: i32) -> (i32, i32) {
    %c0_i32 = arith.constant 0 : i32
    %c0_i32_0 = arith.constant 0 : i32
    %c0_i32_1 = arith.constant 0 : i32
    return %c0_i32, %c0_i32_0 : i32, i32
  }
  func.func @transform_5(%arg0: i32, %arg1: i32) -> (i32, i32, i32, i32) {
    %c0_i32 = arith.constant 0 : i32
    %c0_i32_0 = arith.constant 0 : i32
    %c0_i32_1 = arith.constant 0 : i32
    return %arg0, %arg1, %c0_i32, %c0_i32_0 : i32, i32, i32, i32
  }
}

</mosaic_0001>

<bundles_post_ra>
// kernel: tpu_custom_call.1
= control target key start
LH: loop header
LB: loop body
LE: loop exit
PB: predicated region body
PF: predicated region fallthrough
CT: control target
= control target key end

     0   :  { %s5385_s0 = inlined_call_operand.hbm [shape: bf16[2,2,10,24,128], index: 0, kind: input, shape index: {}]   ;;  %s5386_s1 = inlined_call_operand.hbm [shape: bf16[128,128], index: 1, kind: input, shape index: {}]   ;;  %s5387_s2 = inlined_call_operand.vmem [shape: f32[1,128], index: 2, kind: input, shape index: {}]   ;;  %s5388_s3 = inlined_call_operand.hbm [shape: bf16[9,128,128], index: 3, kind: input, shape index: {}]   ;;  %s5389_s4 = inlined_call_operand.vmem [shape: f32[1,128], index: 4, kind: input, shape index: {}]   ;;  %s5390_s5 = inlined_call_operand.hbm [shape: bf16[2,2,128,128], index: 5, kind: output, shape index: {}]  }
   0x1   :  { %5400 = sst [smem:[#allocation43_spill]] %s5386_s1 }
   0x2   :  { %5401 = sst [smem:[#allocation44_spill]] %s5388_s3 }
   0x3   :  { %5402 = sst [smem:[#allocation45_spill]] %s5390_s5 }
   0x4   :  { %10 = vsyncpa [#allocation4], 0 }
   0x5   :  { %12 = vsyncpa [#allocation4 + $0x1], 0 }
   0x6   :  { %13 = vsyncpa [#allocation7], 0 }
   0x7   :  { %14 = vsyncpa [#allocation5], 0 }
   0x8   :  { %16 = vsyncpa [#allocation5 + $0x1], 0  ;;  %s4539_s18 = smov 0   ;;  %s4541_s19 = smov 0  }
   0x9   :  { %s4543_s20 = smov 0   ;;  %s4545_s21 = smov 0  }
   0xa   :  { %s4547_s22 = smov 0   ;;  %s4549_s23 = smov 0  }
   0xb   :  { %s4551_s24 = smov 0   ;;  %s4553_s25 = smov 0  }
   0xc LB: > { %5403 = sst [smem:[#allocation13_spill]] %s4469_s18  ;;  %s3174_s26 = sadd.s32 4294967295, %s4497_s25   ;;  %s4497_s25 = sphi %s4553_s25, %s22_s25   ;;  %s4493_s24 = sphi %s4551_s24, %s5487_s24   ;;  %s4489_s23 = sphi %s4549_s23, %s5486_s23   ;;  %s4485_s22 = sphi %s4547_s22, %s5485_s22   ;;  %s4481_s21 = sphi %s4545_s21, %s5484_s21   ;;  %s4477_s20 = sphi %s4543_s20, %s5483_s20   ;;  %s4473_s19 = sphi %s4541_s19, %s5482_s19   ;;  %s4469_s18 = sphi %s4539_s18, %s5481_s18  }
   0xd   : > { %5404 = sst [smem:[#allocation14_spill]] %s4497_s25  ;;  %s3175_s27 = sadd.s32 4294967294, %s4497_s25  }
   0xe   : > { %p56_p0 = scmp.ne.s32.totalorder %s4473_s19, %s4469_s18  ;;  %p4583_p1 = scmp.eq.s32.totalorder %s3174_s26, 0 }
   0xf   : > { %p4587_p2 = scmp.eq.s32.totalorder %s3174_s26, 3  ;;  %p172_p3 = scmp.eq.s32.totalorder %s3175_s27, 3 }
  0x10   : > { %p4593_p4 = por %p4583_p1, %p56_p0  ;;  %p3176_p5 = scmp.ge.s32.totalorder %s4497_s25, 1 }
  0x11   : > { %p4598_p6 = por %p172_p3, %p56_p0  ;;  %p179_p7 = scmp.lt.s32.totalorder %s4497_s25, 5 }
  0x12   : > { %s4499_s8 = smov [#allocation6]   ;;  %s4500_s11 = smov [#allocation8]  }
  0x13   : > { %s5408_s6 = scalar_select %p4598_p6, 1, 0 }
  0x14   : > { %p4603_p8 = pnand %p3176_p5, %p179_p7  ;;  %s191_s9 = sshll.u32 %s4499_s8, 4  ;;  %s192_s9 = int_to_ptr.vmem [resolvable:$true] %s191_s9 }
  0x15   : > { %5409 = sst [smem:[#allocation15_spill]] %s5408_s6  ;;  %s207_s12 = sshll.u32 %s4500_s11, 4  ;;  %s208_s12 = int_to_ptr.vmem [resolvable:$true] %s207_s12 }
  0x16   : > { %p4119_p9 = pneg %p4603_p8  ;;  %s4328_s13 = scalar_lea.vmem %s192_s9, 1024 }
  0x17   : > { %p4329_p12 = scmp.ne.s32.totalorder %s192_s9, %s4328_s13  ;;  %p4336_p3 = scmp.lt.s32.totalorder %s192_s9, %s192_s9 }
  0x18   : > { %p4611_p10 = pnand %p4119_p9, %p4583_p1  ;;  %p4337_p5 = scmp.lt.s32.totalorder %s4328_s13, %s4328_s13 }
  0x1a   : > { %p4319_p11 = pneg %p4611_p10  ;;  %p4338_p7 = por %p4337_p5, %p4336_p3 }
  0x1c   : > { %p4331_p13 = pnand %p4329_p12, %p4319_p11 }
  0x1e   : > { %p4332_p0 = pneg %p4331_p13 }
  0x20   : > { %p4339_p9 = pnand %p4338_p7, %p4332_p0 }
  0x22   : > { %4342 = shalt.err (!%p4339_p9)
}
  0x23   : > { %s5391_s14 = smov 64   ;;  %s5392_s15 = smov 4  }
  0x24   : > { %s5412_s1 = sld [smem:[#allocation43_spill]]  ;;  %s4354_s26 = scalar_lea.vmem %s208_s12, 9216 }
  0x25   : > { %p4355_p12 = scmp.ne.s32.totalorder %s208_s12, %s4354_s26  ;;  %p4362_p0 = scmp.lt.s32.totalorder %s208_s12, %s208_s12 }
  0x26   : > { %p4363_p5 = scmp.lt.s32.totalorder %s4354_s26, %s4354_s26 }
  0x27   : > { %p4357_p13 = pnand %p4355_p12, %p4319_p11 }
  0x28   : > { %p4364_p7 = por %p4363_p5, %p4362_p0 }
  0x29   : > { %p4358_p3 = pneg %p4357_p13 }
  0x2a   : > { %4122 = dma.hbm_to_vmem [thread:$0]  (!%p4611_p10), %s5412_s1, 1024, %s192_s9, [#allocation7], %s5391_s14, %s5391_s14, %s5392_s15  }
  0x2b   : > { %p4365_p9 = pnand %p4364_p7, %p4358_p3 }
  0x2d   : > { %4368 = shalt.err (!%p4365_p9)
}
  0x2e   : > { %s5413_s3 = sld [smem:[#allocation44_spill]]  ;;  %s31_s9 = sadd.s32 1, %s4489_s23 }
  0x2f   : > { %s34_s10 = sadd.s32 1, %s4493_s24  ;;  %p32_p11 = scmp.ge.s32.totalorder %s31_s9, 2 }
  0x30   : > { %s43_s11 = sadd.s32 1, %s4477_s20  ;;  %p50_p12 = scmp.ne.s32.totalorder %s4477_s20, %s4473_s19 }
  0x31   : > { %p51_p13 = scmp.eq.s32.totalorder %s4497_s25, 0  ;;  %s5489_s9 = smov (%p32_p11, %s31_s9), 0 }
  0x32   : > { %5414 = sst [smem:[#allocation16_spill]] %s5489_s9  ;;  %s5491_s10 = smov (!%p32_p11, %s34_s10), %s4493_s24 }
  0x33   : > { %s39_s13 = ssub.s32 %s4489_s23, %s5489_s9  ;;  %p4650_p3 = por %p51_p13, %p50_p12 }
  0x34   : > { %4125 = dma.hbm_to_vmem [thread:$0]  (!%p4611_p10), %s5413_s3, 9216, %s208_s12, [#allocation7], %s5391_s14, %s5391_s14, %s5392_s15  }
  0x35   : > { %p36_p10 = scmp.ge.s32.totalorder %s5491_s10, 2  ;;  %p4656_p0 = por %p4587_p2, %p50_p12 }
  0x36   : > { %p4136_p5 = scmp.lt.s32.totalorder %s4497_s25, 4  ;;  %s224_s17 = sand.u32 1, %s4477_s20  }
  0x37   : > { %s5493_s10 = smov (%p36_p10, %s5491_s10), 0  ;;  %s4103_s26 = smul.u32 120, %s224_s17 }
  0x38   : > { %5417 = sst [smem:[#allocation17_spill]] %s5493_s10  ;;  %s38_s27 = ssub.s32 %s4493_s24, %s5493_s10 }
  0x39   : > { %s4104_s8 = smul.u32 30, %s4489_s23  ;;  %s40_s14 = sor.u32 %s39_s13, %s38_s27 }
  0x3a   : > { %p41_p7 = scmp.eq.s32.totalorder %s40_s14, 0  ;;  %s4105_s15 = smul.u32 60, %s4493_s24 }
  0x3b   : > { %s228_s1 = scalar_lea.vmem [#allocation3], %s4103_s26  ;;  %p4670_p9 = pnand %p4136_p5, %p4650_p3 }
  0x3c   : > { %s237_s3 = sshll.u32 %s228_s1, 4  ;;  %s234_s6 = sadd.s32 %s4105_s15, %s4104_s8  ;;  %s238_s3 = int_to_ptr.vmem [resolvable:$true] %s237_s3 }
  0x3d   : > { %s4675_s9 = scalar_select %p41_p7, %s4477_s20, %s43_s11  }
  0x3e   : > { %s3180_s18 = sshll.u32 %s234_s6, 6  ;;  %s225_s13 = scalar_lea.sflag [#allocation4], %s224_s17 }
  0x3f   : > { %s236_s10 = scalar_lea.hbm %s5385_s0, %s3180_s18  ;;  %p4371_p2 = pneg %p4670_p9 }
  0x40   : > { %s4382_s14 = scalar_lea.vmem %s238_s3, 1920  ;;  %s4503_s1 = smov [#allocation3]  }
  0x41   : > { %p4383_p11 = scmp.ne.s32.totalorder %s238_s3, %s4382_s14  ;;  %s4387_s16 = sshll.u32 %s4503_s1, 4  ;;  %s4388_s16 = int_to_ptr.vmem [resolvable:$false] %s4387_s16 }
  0x42   : > { %s4389_s26 = scalar_lea.vmem %s4388_s16, 3840  ;;  %p4390_p3 = scmp.lt.s32.totalorder %s238_s3, %s4388_s16 }
  0x43   : > { %p4385_p12 = pnand %p4383_p11, %p4371_p2  ;;  %p4391_p10 = scmp.lt.s32.totalorder %s4389_s26, %s4382_s14 }
  0x45   : > { %p4386_p13 = pneg %p4385_p12  ;;  %p4392_p5 = por %p4391_p10, %p4390_p3 }
  0x47   : > { %p4393_p7 = pnand %p4392_p5, %p4386_p13 }
  0x49   : > { %4396 = shalt.err (!%p4393_p7)
}
  0x4a   : > { %s5419_s5 = smov 4   ;;  %s5420_s18 = smov 64  }
  0x4b   : > { %4129 = dma.hbm_to_vmem [thread:$0]  (!%p4670_p9), %s236_s10, 1920, %s238_s3, %s225_s13, %s5420_s18, %s5420_s18, %s5419_s5  }
  0x4c   : > { %249 = sbr.rel (%p4603_p8) target bundleno = 818 (0x332), region = 40 }
  0x51   : > { %s4690_s25 = sand.u32 1, %s4473_s19  }
  0x52   : > { %s4106_s6 = smul.u32 120, %s4690_s25  ;;  %s252_s15 = scalar_lea.sflag [#allocation4], %s4690_s25 }
  0x54   : > { %s4694_s11 = scalar_lea.vmem [#allocation3], %s4106_s6 }
  0x55   : > { %4456 = dma.done.wait (%p4593_p4), %s252_s15, 1920  }
  0x56   : > { %4458 = vsyncadd (%p4593_p4), %s252_s15, 4294965376 }
  0x57   : > { %4460 = dma.done.wait (%p4583_p1), [#allocation7], 10240  }
  0x58   : > { %4462 = vsyncadd (%p4583_p1), [#allocation7], 4294957056  ;;  %v4504_v0 = vmov 0.0   ;;  %vm4505_vm0 = vmmov 0   ;;  %v4212_v1 = vld [vmem:[#allocation6 + $0x38] sm:$0xff]   ;;  %v4213_v2 = vld [vmem:[#allocation6 + $0x30] sm:$0xff]  }
  0x59   : > { %3723 = vmatprep.subr.bf16.mxu0 %v4504_v0  ;;  %3739 = vmatprep.mubr.msk.bf16.mxu0 %vm4505_vm0, %v4504_v0  ;;  %v4214_v3 = vld [vmem:[#allocation6 + $0x28] sm:$0xff]   ;;  %v4215_v4 = vld [vmem:[#allocation6 + $0x20] sm:$0xff]   ;;  %v4216_v5 = vld [vmem:[#allocation6 + $0x18] sm:$0xff]   ;;  %vm2277_vm1 = vcmask 1042432   ;;  %vm2278_vm2 = vcmask 1046532   ;;  %s3184_s10 = sshll.u32 %s4690_s25, 6 }
  0x5a   : > { %3724 = vmatpush3.bf16.msra.mxu0 %v4212_v1  ;;  %v4217_v6 = vld [vmem:[#allocation6 + $0x10] sm:$0xff]   ;;  %v4218_v7 = vld [vmem:[#allocation6 + $0x8] sm:$0xff]   ;;  %v4219_v8 = vld [vmem:[#allocation6] sm:$0xff]   ;;  %vm1426_vm3 = vsmask.f32 3328  ;;  %s5278_s17 = scalar_lea.vmem [#allocation9], %s3184_s10 }
  0x5b   : > { %3725 = vmatprep.subr.bf16.mxu0 %v4504_v0  ;;  %v4220_v9 = vld [vmem:[%s4694_s11] sm:$0xff]   ;;  %v4221_v10 = vld [vmem:[%s4694_s11 + $0x8] sm:$0xff]   ;;  %v4222_v11 = vld [vmem:[%s4694_s11 + $0x10] sm:$0xff]   ;;  %vm1427_vm4 = vsmask.f32 7440  ;;  %s3369_s27 = sshll.u32 %s4481_s21, 4 }
  0x5c   : > { %v4223_v12 = vld [vmem:[%s4694_s11 + $0x18] sm:$0xff]   ;;  %v4224_v13 = vld [vmem:[%s4694_s11 + $0x20] sm:$0xff]   ;;  %v4225_v14 = vld [vmem:[%s4694_s11 + $0x28] sm:$0xff]   ;;  %s3370_s8 = sshll.u32 %s4485_s22, 5  ;;  %s3065_s21 = sshll.u32 %s5278_s17, 4  ;;  %s5325_s21 = int_to_ptr.vmem [resolvable:$true] %s3065_s21 }
  0x5d   : > { %v4226_v15 = vld [vmem:[%s4694_s11 + $0x30] sm:$0xff]   ;;  %v4227_v16 = vld [vmem:[%s4694_s11 + $0x38] sm:$0xff]   ;;  %v4228_v17 = vld [vmem:[%s4694_s11 + $0x40] sm:$0xff]   ;;  %s3062_s29 = sadd.s32 %s3370_s8, %s3369_s27  ;;  %s5475_s1 = sld [smem:[#allocation45_spill]] }
  0x5e   : > { %3726 = vmatpush3.bf16.msra.mxu0 %v4213_v2  ;;  %v4229_v18 = vld [vmem:[%s4694_s11 + $0x48] sm:$0xff]   ;;  %v4230_v20 = vld [vmem:[%s4694_s11 + $0x50] sm:$0xff]   ;;  %v4237_v22 = vld [vmem:[#allocation8 + $0xe8] sm:$0xff]   ;;  %s3371_s22 = sshll.u32 %s3062_s29, 6  ;;  %s3050_s26 = scalar_lea.sflag [#allocation5], %s4690_s25 }
  0x5f   : > { %3727 = vmatprep.subr.bf16.mxu0 %v4504_v0  ;;  %v4235_v19 = vld [vmem:[#allocation8 + $0xf8] sm:$0xff]   ;;  %v4236_v21 = vld [vmem:[#allocation8 + $0xf0] sm:$0xff]   ;;  %v4231_v23 = vld [vmem:[%s4694_s11 + $0x58] sm:$0xff]   ;;  %s4397_s5 = scalar_lea.vmem %s5325_s21, 1024  ;;  %s4506_s18 = smov [#allocation9]  }
  0x60   : > { %3799 = vmatprep.subr.bf16.mxu1 %v4235_v19  ;;  %v4238_v24 = vld [vmem:[#allocation8 + $0xe0] sm:$0xff]   ;;  %v4239_v25 = vld [vmem:[#allocation8 + $0x138] sm:$0xff]   ;;  %v4232_v27 = vld [vmem:[%s4694_s11 + $0x60] sm:$0xff]   ;;  %p4398_p1 = scmp.ne.s32.totalorder %s5325_s21, %s4397_s5  ;;  %s4401_s6 = sshll.u32 %s4506_s18, 4  ;;  %s4402_s6 = int_to_ptr.vmem [resolvable:$false] %s4401_s6 }
  0x61   : > { %3800 = vmatpush3.bf16.msra.mxu1 %v4235_v19  ;;  %v4240_v26 = vld [vmem:[#allocation8 + $0xd8] sm:$0xff]   ;;  %v4241_v28 = vld [vmem:[#allocation8 + $0x130] sm:$0xff]   ;;  %v4243_v30 = vld [vmem:[#allocation8 + $0x128] sm:$0xff]   ;;  %s4403_s15 = scalar_lea.vmem %s4402_s6, 2048  ;;  %p4404_p9 = scmp.lt.s32.totalorder %s5325_s21, %s4402_s6 }
  0x62   : > { %3728 = vmatpush3.bf16.msra.mxu0 %v4214_v3  ;;  %3801 = vmatprep.subr.bf16.mxu1 %v4236_v21  ;;  %v4242_v29 = vld [vmem:[#allocation8 + $0xd0] sm:$0xff]   ;;  %v4244_v31 = vld [vmem:[#allocation8 + $0xc8] sm:$0xff]   ;;  %v4246_v33 = vld [vmem:[#allocation8 + $0x120] sm:$0xff]   ;;  %p4399_p4 = pnand %p4398_p1, %p4656_p0  ;;  %p4405_p2 = scmp.lt.s32.totalorder %s4403_s15, %s4397_s5 }
  0x63   : > { %3729 = vmatprep.subr.bf16.mxu0 %v4504_v0  ;;  %v4233_v32 = vld [vmem:[%s4694_s11 + $0x68] sm:$0xff]   ;;  %v4247_v34 = vld [vmem:[#allocation8 + $0xc0] sm:$0xff]   ;;  %v4251_v38 = vld [vmem:[#allocation8 + $0x108] sm:$0xff]   ;;  %s5331_s16 = scalar_lea.hbm %s5475_s1, %s3371_s22 }
  0x64   : > { %v4248_v35 = vld [vmem:[#allocation8 + $0x118] sm:$0xff]   ;;  %v4250_v37 = vld [vmem:[#allocation8 + $0x110] sm:$0xff]   ;;  %v4252_v39 = vld [vmem:[#allocation8 + $0x100] sm:$0xff]   ;;  %p4400_p8 = pneg %p4399_p4  ;;  %p4406_p11 = por %p4405_p2, %p4404_p9 }
  0x65   : > { %3802 = vmatpush3.bf16.msra.mxu1 %v4236_v21  ;;  %v4234_v36 = vld [vmem:[%s4694_s11 + $0x70] sm:$0xff]   ;;  %vm4783_vm5 = vmor %vm2277_vm1, %vm2278_vm2 }
  0x66   : > { %3730 = vmatpush3.bf16.msra.mxu0 %v4215_v4  ;;  %3803 = vmatprep.subr.bf16.mxu1 %v4237_v22  ;;  %v4757_v40 = vld [vmem:[#allocation8 + $0x38] sm:$0xff]   ;;  %vm4793_vm6 = vmor %vm1426_vm3, %vm1427_vm4  ;;  %p4407_p12 = pnand %p4406_p11, %p4400_p8 }
  0x67   : > { %3731 = vmatprep.subr.bf16.mxu0 %v4504_v0  ;;  %v4760_v41 = vld [vmem:[#allocation8 + $0xb8] sm:$0xff]  }
  0x68   : > { %v4766_v42 = vld [vmem:[%s5387_s2] ss:$0 sm:$0xff] }
  0x69   : > { %3804 = vmatpush3.bf16.msra.mxu1 %v4237_v22 }
  0x6a   : > { %3732 = vmatpush3.bf16.msra.mxu0 %v4216_v5  ;;  %3805 = vmatprep.subr.bf16.mxu1 %v4238_v24 }
  0x6b   : > { %3733 = vmatprep.subr.bf16.mxu0 %v4504_v0 }
  0x6d   : > { %3806 = vmatpush3.bf16.msra.mxu1 %v4238_v24 }
  0x6e   : > { %3734 = vmatpush3.bf16.msra.mxu0 %v4217_v6  ;;  %3807 = vmatprep.subr.bf16.mxu1 %v4240_v26 }
  0x6f   : > { %3735 = vmatprep.subr.bf16.mxu0 %v4504_v0 }
  0x71   : > { %3808 = vmatpush3.bf16.msra.mxu1 %v4240_v26 }
  0x72   : > { %3736 = vmatpush3.bf16.msra.mxu0 %v4218_v7  ;;  %3809 = vmatprep.subr.bf16.mxu1 %v4242_v29 }
  0x73   : > { %3737 = vmatprep.subr.bf16.mxu0 %v4504_v0 }
  0x75   : > { %3810 = vmatpush3.bf16.msra.mxu1 %v4242_v29 }
  0x76   : > { %3738 = vmatpush3.bf16.msra.mxu0 %v4219_v8  ;;  %3811 = vmatprep.subr.bf16.mxu1 %v4244_v31 }
  0x77   : > { %3927 = vmatprep.subr.bf16.mxu0 %v4239_v25 }
  0x79   : > { %3740 = vmatmul.mubr.bf16.vlgmr.msra.gmra.mxu0 %v4220_v9  ;;  %3812 = vmatpush3.bf16.msra.mxu1 %v4244_v31 }
  0x7a   : > { %3743 = vmatprep.mubr.msk.bf16.mxu0 %vm4505_vm0, %v4504_v0  ;;  %3928 = vmatpush3.bf16.msra.mxu0 %v4239_v25 }
  0x7b   : > { %3929 = vmatprep.subr.bf16.mxu0 %v4241_v28  ;;  %3813 = vmatprep.subr.bf16.mxu1 %v4247_v34 }
  0x7d   : > { %3814 = vmatpush3.bf16.msra.mxu1 %v4247_v34 }
  0x7e   : > { %3930 = vmatpush3.bf16.msra.mxu0 %v4241_v28  ;;  %3831 = vmatprep.subr.bf16.mxu1 %v4757_v40 }
  0x7f   : > { %3931 = vmatprep.subr.bf16.mxu0 %v4243_v30 }
  0x81   : > { %3744 = vmatmul.mubr.bf16.gmra.mxu0 %v4221_v10 }
  0x82   : > { %3747 = vmatprep.mubr.msk.bf16.mxu0 %vm4505_vm0, %v4504_v0  ;;  %3932 = vmatpush3.bf16.msra.mxu0 %v4243_v30 }
  0x83   : > { %3933 = vmatprep.subr.bf16.mxu0 %v4246_v33 }
  0x86   : > { %3934 = vmatpush3.bf16.msra.mxu0 %v4246_v33 }
  0x87   : > { %3935 = vmatprep.subr.bf16.mxu0 %v4248_v35 }
  0x89   : > { %3748 = vmatmul.mubr.bf16.gmra.mxu0 %v4222_v11 }
  0x8a   : > { %3751 = vmatprep.mubr.msk.bf16.mxu0 %vm4505_vm0, %v4504_v0  ;;  %3936 = vmatpush3.bf16.msra.mxu0 %v4248_v35 }
  0x8b   : > { %3937 = vmatprep.subr.bf16.mxu0 %v4250_v37 }
  0x8e   : > { %3938 = vmatpush3.bf16.msra.mxu0 %v4250_v37 }
  0x8f   : > { %3939 = vmatprep.subr.bf16.mxu0 %v4251_v38 }
  0x91   : > { %3752 = vmatmul.mubr.bf16.gmra.mxu0 %v4223_v12 }
  0x92   : > { %3755 = vmatprep.mubr.msk.bf16.mxu0 %vm4505_vm0, %v4504_v0  ;;  %3940 = vmatpush3.bf16.msra.mxu0 %v4251_v38 }
  0x93   : > { %3941 = vmatprep.subr.bf16.mxu0 %v4252_v39 }
  0x96   : > { %3942 = vmatpush3.bf16.msra.mxu0 %v4252_v39 }
  0x97   : > { %3991 = vmatprep.subr.bf16.mxu0 %v4760_v41 }
  0x99   : > { %3756 = vmatmul.mubr.bf16.gmra.mxu0 %v4224_v13 }
  0x9a   : > { %3759 = vmatprep.mubr.msk.bf16.mxu0 %vm4505_vm0, %v4504_v0 }
  0xa1   : > { %3760 = vmatmul.mubr.bf16.gmra.mxu0 %v4225_v14 }
  0xa2   : > { %3763 = vmatprep.mubr.msk.bf16.mxu0 %vm4505_vm0, %v4504_v0 }
  0xa9   : > { %3764 = vmatmul.mubr.bf16.gmra.mxu0 %v4226_v15 }
  0xaa   : > { %3767 = vmatprep.mubr.msk.bf16.mxu0 %vm4505_vm0, %v4504_v0 }
  0xb1   : > { %3768 = vmatmul.mubr.bf16.gmra.mxu0 %v4227_v16 }
  0xb2   : > { %3771 = vmatprep.mubr.msk.bf16.mxu0 %vm4505_vm0, %v4504_v0 }
  0xb9   : > { %3772 = vmatmul.mubr.bf16.gmra.mxu0 %v4228_v17 }
  0xba   : > { %3775 = vmatprep.mubr.msk.bf16.mxu0 %vm4505_vm0, %v4504_v0 }
  0xc1   : > { %3776 = vmatmul.mubr.bf16.gmra.mxu0 %v4229_v18 }
  0xc2   : > { %3779 = vmatprep.mubr.msk.bf16.mxu0 %vm4505_vm0, %v4504_v0 }
  0xc9   : > { %3780 = vmatmul.mubr.bf16.gmra.mxu0 %v4230_v20 }
  0xca   : > { %3783 = vmatprep.mubr.msk.bf16.mxu0 %vm4505_vm0, %v4504_v0 }
  0xd1   : > { %3784 = vmatmul.mubr.bf16.gmra.mxu0 %v4231_v23 }
  0xd2   : > { %3787 = vmatprep.mubr.msk.bf16.mxu0 %vm4505_vm0, %v4504_v0 }
  0xd9   : > { %3788 = vmatmul.mubr.bf16.gmra.mxu0 %v4232_v27 }
  0xda   : > { %3791 = vmatprep.mubr.msk.bf16.mxu0 %vm4505_vm0, %v4504_v0 }
  0xe1   : > { %3792 = vmatmul.mubr.bf16.gmra.mxu0 %v4233_v32 }
  0xe2   : > { %3795 = vmatprep.mubr.msk.bf16.mxu0 %vm4505_vm0, %v4504_v0 }
  0xe9   : > { %3796 = vmatmul.mubr.bf16.gmra.mxu0 %v4234_v36 }
 0x139   : > { %v516_v43 = vpop.f32.mrf.mxu0 }
 0x13a   : > { %v517_v45 = vadd.f32 %v4766_v42, %v516_v43 }
 0x13b   : > { %v3741_v44 = vpop.f32.mrf.mxu0 }
 0x13c   : > { %v635_v49 = vmax.f32 %v517_v45, 0.0 }
 0x13d   : > { %v519_v46 = vpop.f32.mrf.mxu0 }
 0x13e   : > { %v520_v47 = vadd.f32 %v4766_v42, %v519_v46 }
 0x13f   : > { %v3742_v48 = vpop.f32.mrf.mxu0 }
 0x140   : > { %v636_v50 = vmax.f32 %v520_v47, 0.0 }
 0x141   : > { %v524_v51 = vpop.f32.mrf.mxu0 }
 0x142   : > { %v3423_v52 = vpack.c.bf16 %v636_v50, %v635_v49  ;;  %v525_v54 = vadd.f32 %v4766_v42, %v524_v51 }
 0x143   : > { %v3745_v53 = vpop.f32.mrf.mxu0 }
 0x144   : > { %3424 = vst [vmem:[#allocation2] sm:$0xff] %v3423_v52   ;;  %v637_v58 = vmax.f32 %v525_v54, 0.0 }
 0x145   : > { %v527_v55 = vpop.f32.mrf.mxu0 }
 0x146   : > { %v528_v56 = vadd.f32 %v4766_v42, %v527_v55 }
 0x147   : > { %v3746_v57 = vpop.f32.mrf.mxu0 }
 0x148   : > { %v638_v59 = vmax.f32 %v528_v56, 0.0  ;;  %v4258_v56 = vld [vmem:[#allocation8 + $0x30] sm:$0xff]  }
 0x149   : > { %v532_v60 = vpop.f32.mrf.mxu0 }
 0x14a   : > { %v3428_v61 = vpack.c.bf16 %v638_v59, %v637_v58  ;;  %v533_v63 = vadd.f32 %v4766_v42, %v532_v60 }
 0x14b   : > { %v3749_v62 = vpop.f32.mrf.mxu0 }
 0x14c   : > { %3535 = vst [vmem:[#allocation2 + $0x8] sm:$0xff] %v3428_v61   ;;  %v639_v3 = vmax.f32 %v533_v63, 0.0 }
 0x14d   : > { %v535_v0 = vpop.f32.mrf.mxu0 }
 0x14e   : > { %v536_v1 = vadd.f32 %v4766_v42, %v535_v0 }
 0x14f   : > { %v3750_v2 = vpop.f32.mrf.mxu0 }
 0x150   : > { %v640_v4 = vmax.f32 %v536_v1, 0.0 }
 0x151   : > { %v540_v5 = vpop.f32.mrf.mxu0 }
 0x152   : > { %v3433_v6 = vpack.c.bf16 %v640_v4, %v639_v3  ;;  %v541_v9 = vadd.f32 %v4766_v42, %v540_v5 }
 0x153   : > { %v3753_v7 = vpop.f32.mrf.mxu0  ;;  %v1399_v8 = vld [vmem:[#allocation2 + $0xc] sm:$0xf] }
 0x154   : > { %3536 = vst [vmem:[#allocation2 + $0x10] sm:$0xff] %v3433_v6   ;;  %v1454_v11 = vshrl.u32 %v1399_v8, 16  ;;  %v1457_v12 = vshll.u32 %v1399_v8, 16  ;;  %v641_v15 = vmax.f32 %v541_v9, 0.0  ;;  %v2244_v21 = vld [vmem:[#allocation2 + $0xc] sm:$0xe] }
 0x155   : > { %v543_v10 = vpop.f32.mrf.mxu0  ;;  %v3308_v34 = vrot.slane %v2244_v21, 9 }
 0x156   : > { %v544_v13 = vadd.f32 %v4766_v42, %v543_v10  ;;  %v1456_v18 = vrot.slane %v1454_v11, 4  ;;  %v1459_v19 = vrot.slane %v1457_v12, 5  ;;  %v4259_v12 = vld [vmem:[#allocation8 + $0x28] sm:$0xff]  }
 0x157   : > { %v3754_v14 = vpop.f32.mrf.mxu0 }
 0x158   : > { %v642_v16 = vmax.f32 %v544_v13, 0.0  ;;  %v1460_v31 = vor.u32 %v1459_v19, %v1456_v18 }
 0x159   : > { %v548_v17 = vpop.f32.mrf.mxu0 }
 0x15a   : > { %v3438_v20 = vpack.c.bf16 %v642_v16, %v641_v15  ;;  %v549_v22 = vadd.f32 %v4766_v42, %v548_v17  ;;  %v1461_v53 = vrot.slane %v1460_v31, 4 }
 0x15b   : > { %v3757_v23 = vpop.f32.mrf.mxu0  ;;  %v4777_v24 = vld [vmem:[#allocation2 + $0xc] sm:$0xff]   ;;  %v1401_v26 = vld [vmem:[#allocation2 + $0x14] sm:$0x1] }
 0x15c   : > { %v1400_v25 = vld [vmem:[#allocation2 + $0x10] sm:$0xf]  ;;  %3537 = vst [vmem:[#allocation2 + $0x18] sm:$0xff] %v3438_v20   ;;  %3815 = vmatprep.mubr.bf16.mxu1 %v4777_v24  ;;  %v1473_v32 = vshll.u32 %v1401_v26, 16  ;;  %v2292_v33 = vrot.slane %v1401_v26, 5  ;;  %v643_v39 = vmax.f32 %v549_v22, 0.0 }
 0x15d   : > { %v1463_v27 = vshll.u32 %v1400_v25, 16  ;;  %v1467_v28 = vshrl.u32 %v1400_v25, 16  ;;  %v2289_v29 = vrot.slane %v1400_v25, 5  ;;  %v551_v30 = vpop.f32.mrf.mxu0  ;;  %v4260_v23 = vld [vmem:[#allocation8 + $0x20] sm:$0xff]  }
 0x15e   : > { %v552_v35 = vadd.f32 %v4766_v42, %v551_v30  ;;  %v1475_v55 = vrot.slane %v1473_v32, 5 }
 0x15f   : > { %v1465_v36 = vrot.slane %v1463_v27, 5  ;;  %v1469_v37 = vrot.slane %v1467_v28, 4  ;;  %v2291_v38 = vrot.slane %v2289_v29, 4  ;;  %v3758_v43 = vpop.f32.mrf.mxu0  ;;  %v2290_v47 = vsel %vm4783_vm5, %v3308_v34, %v2289_v29 }
 0x160   : > { %v644_v45 = vmax.f32 %v552_v35, 0.0  ;;  %v4262_v43 = vld [vmem:[#allocation8 + $0x18] sm:$0xff]  }
 0x161   : > { %v1470_v46 = vor.u32 %v1469_v37, %v1465_v36  ;;  %v2293_v48 = vsel %vm4783_vm5, %v2291_v38, %v2292_v33  ;;  %v556_v49 = vpop.f32.mrf.mxu0  ;;  %v1466_v60 = vsel %vm4793_vm6, %v1461_v53, %v1465_v36 }
 0x162   : > { %v4791_v50 = vcombine.low %v2290_v47, %v2293_v48  ;;  %v3443_v51 = vpack.c.bf16 %v644_v45, %v643_v39  ;;  %v557_v59 = vadd.f32 %v4766_v42, %v556_v49 }
 0x163   : > { %v1471_v54 = vrot.slane %v1470_v46, 4  ;;  %v3761_v57 = vpop.f32.mrf.mxu0  ;;  %v4797_v58 = vld [vmem:[#allocation2 + $0x18] sm:$0xff]  }
 0x164   : > { %3538 = vst [vmem:[#allocation2 + $0x20] sm:$0xff] %v3443_v51   ;;  %v1402_v62 = vld [vmem:[#allocation2 + $0x18] sm:$0xf]  ;;  %v1403_v63 = vld [vmem:[#allocation2 + $0x1c] sm:$0xf]  ;;  %3816 = vmatmul.mubr.bf16.vlgmr.msra.gmra.mxu1 %v4797_v58  ;;  %v645_v14 = vmax.f32 %v557_v59, 0.0 }
 0x165   : > { %v1476_v61 = vsel %vm4793_vm6, %v1471_v54, %v1475_v55  ;;  %v559_v0 = vpop.f32.mrf.mxu0  ;;  %v1478_v2 = vshrl.u32 %v1402_v62, 16  ;;  %v1481_v3 = vshll.u32 %v1402_v62, 16  ;;  %v1487_v4 = vshll.u32 %v1403_v63, 16  ;;  %3832 = vmatpush3.bf16.msra.mxu1 %v4757_v40  ;;  %v2245_v7 = vld [vmem:[#allocation2 + $0x18] sm:$0xe] }
 0x166   : > { %v4805_v1 = vcombine.low %v1466_v60, %v1476_v61  ;;  %v560_v5 = vadd.f32 %v4766_v42, %v559_v0  ;;  %v1491_v6 = vshrl.u32 %v1403_v63, 16  ;;  %3833 = vmatprep.subr.bf16.mxu1 %v4258_v56  ;;  %v2296_v13 = vrot.slane %v1403_v63, 5  ;;  %v4265_v59 = vld [vmem:[#allocation8 + $0x10] sm:$0xff]  }
 0x167   : > { %v3762_v8 = vpop.f32.mrf.mxu0  ;;  %v1480_v9 = vrot.slane %v1478_v2, 4  ;;  %v1483_v10 = vrot.slane %v1481_v3, 5  ;;  %v1489_v11 = vrot.slane %v1487_v4, 5  ;;  %v3309_v19 = vrot.slane %v2245_v7, 9 }
 0x168   : > { %3943 = vmatprep.mubr.bf16.mxu0 %v4805_v1  ;;  %v646_v15 = vmax.f32 %v560_v5, 0.0  ;;  %v1493_v16 = vrot.slane %v1491_v6, 4  ;;  %v2298_v25 = vrot.slane %v2296_v13, 4  ;;  %v4266_v8 = vld [vmem:[#allocation8 + $0xa8] sm:$0xff]  }
 0x169   : > { %v564_v17 = vpop.f32.mrf.mxu0  ;;  %v1484_v18 = vor.u32 %v1483_v10, %v1480_v9  ;;  %3834 = vmatpush3.bf16.msra.mxu1 %v4258_v56  ;;  %v2297_v34 = vsel %vm4783_vm5, %v3309_v19, %v2296_v13  ;;  %v4264_v56 = vld [vmem:[#allocation8 + $0xb0] sm:$0xff]  }
 0x16a   : > { %v3448_v20 = vpack.c.bf16 %v646_v15, %v645_v14  ;;  %v1494_v21 = vor.u32 %v1493_v16, %v1489_v11  ;;  %3835 = vmatprep.subr.bf16.mxu1 %v4259_v12  ;;  %v565_v26 = vadd.f32 %v4766_v42, %v564_v17  ;;  %v4267_v14 = vld [vmem:[#allocation8 + $0x8] sm:$0xff]  }
 0x16b   : > { %v3765_v40 = vpop.f32.mrf.mxu0  ;;  %v1404_v22 = vld [vmem:[#allocation2 + $0x20] sm:$0x1]  ;;  %v1485_v27 = vrot.slane %v1484_v18, 4  ;;  %v1405_v29 = vld [vmem:[#allocation2 + $0x24] sm:$0xf] }
 0x16c   : > { %3539 = vst [vmem:[#allocation2 + $0x28] sm:$0xff] %v3448_v20   ;;  %v1497_v28 = vshll.u32 %v1404_v22, 16  ;;  %v2299_v30 = vrot.slane %v1404_v22, 5  ;;  %v1502_v32 = vshrl.u32 %v1405_v29, 16  ;;  %v1505_v33 = vshll.u32 %v1405_v29, 16  ;;  %v4270_v40 = vld [vmem:[#allocation8 + $0xa0] sm:$0xff]  }
 0x16d   : > { %v567_v31 = vpop.f32.mrf.mxu0  ;;  %v1495_v36 = vrot.slane %v1494_v21, 4  ;;  %3836 = vmatpush3.bf16.msra.mxu1 %v4259_v12  ;;  %v647_v46 = vmax.f32 %v565_v26, 0.0  ;;  %v1490_v48 = vsel %vm4793_vm6, %v1485_v27, %v1489_v11  ;;  %v2246_v60 = vld [vmem:[#allocation2 + $0x24] sm:$0xe] }
 0x16e   : > { %v568_v35 = vadd.f32 %v4766_v42, %v567_v31  ;;  %v1499_v37 = vrot.slane %v1497_v28, 5  ;;  %v2300_v38 = vsel %vm4783_vm5, %v2298_v25, %v2299_v30  ;;  %3837 = vmatprep.subr.bf16.mxu1 %v4260_v23  ;;  %v1504_v54 = vrot.slane %v1502_v32, 4  ;;  %v4271_v28 = vld [vmem:[#allocation8] sm:$0xff]  }
 0x16f   : > { %v3766_v39 = vpop.f32.mrf.mxu0  ;;  %v4816_v45 = vcombine.low %v2297_v34, %v2300_v38  ;;  %v1507_v55 = vrot.slane %v1505_v33, 5  ;;  %v3310_v15 = vrot.slane %v2246_v60, 9 }
 0x170   : > { %v648_v47 = vmax.f32 %v568_v35, 0.0  ;;  %v1500_v49 = vsel %vm4793_vm6, %v1495_v36, %v1499_v37 }
 0x171   : > { %v572_v51 = vpop.f32.mrf.mxu0  ;;  %v4822_v53 = vcombine.low %v1490_v48, %v1500_v49  ;;  %3838 = vmatpush3.bf16.msra.mxu1 %v4260_v23  ;;  %v1508_v7 = vor.u32 %v1507_v55, %v1504_v54 }
 0x172   : > { %v3453_v57 = vpack.c.bf16 %v648_v47, %v647_v46  ;;  %3839 = vmatprep.subr.bf16.mxu1 %v4262_v43  ;;  %v573_v0 = vadd.f32 %v4766_v42, %v572_v51  ;;  %v4272_v47 = vld [vmem:[#allocation8 + $0x98] sm:$0xff]  }
 0x173   : > { %v3769_v61 = vpop.f32.mrf.mxu0  ;;  %3944 = vmatmul.mubr.bf16.vlgmr.msra.gmra.mxu0 %v4822_v53  ;;  %v4825_v62 = vld [vmem:[#allocation2 + $0x24] sm:$0xff]   ;;  %v1407_v2 = vld [vmem:[#allocation2 + $0x2c] sm:$0x1]  ;;  %v1509_v21 = vrot.slane %v1508_v7, 4 }
 0x174   : > { %v1406_v63 = vld [vmem:[#allocation2 + $0x28] sm:$0xf]  ;;  %3540 = vst [vmem:[#allocation2 + $0x30] sm:$0xff] %v3453_v57   ;;  %3992 = vmatpush3.bf16.msra.mxu0 %v4760_v41  ;;  %3819 = vmatprep.mubr.bf16.mxu1 %v4825_v62  ;;  %v1521_v12 = vshll.u32 %v1407_v2, 16  ;;  %v2306_v17 = vrot.slane %v1407_v2, 5  ;;  %v649_v41 = vmax.f32 %v573_v0, 0.0 }
 0x175   : > { %v1511_v3 = vshll.u32 %v1406_v63, 16  ;;  %v1515_v4 = vshrl.u32 %v1406_v63, 16  ;;  %v2303_v5 = vrot.slane %v1406_v63, 5  ;;  %v575_v6 = vpop.f32.mrf.mxu0  ;;  %3993 = vmatprep.subr.bf16.mxu0 %v4264_v56  ;;  %3840 = vmatpush3.bf16.msra.mxu1 %v4262_v43 }
 0x176   : > { %v576_v9 = vadd.f32 %v4766_v42, %v575_v6  ;;  %3841 = vmatprep.subr.bf16.mxu1 %v4265_v59  ;;  %v1523_v27 = vrot.slane %v1521_v12, 5 }
 0x177   : > { %v1513_v10 = vrot.slane %v1511_v3, 5  ;;  %v1517_v11 = vrot.slane %v1515_v4, 4  ;;  %v3770_v13 = vpop.f32.mrf.mxu0  ;;  %v2305_v16 = vrot.slane %v2303_v5, 4  ;;  %v2304_v22 = vsel %vm4783_vm5, %v3310_v15, %v2303_v5  ;;  %v4274_v4 = vld [vmem:[#allocation8 + $0x90] sm:$0xff]  }
 0x178   : > { %v650_v18 = vmax.f32 %v576_v9, 0.0  ;;  %3994 = vmatpush3.bf16.msra.mxu0 %v4264_v56 }
 0x179   : > { %v1518_v19 = vor.u32 %v1517_v11, %v1513_v10  ;;  %v580_v20 = vpop.f32.mrf.mxu0  ;;  %3995 = vmatprep.subr.bf16.mxu0 %v4266_v8  ;;  %v2307_v23 = vsel %vm4783_vm5, %v2305_v16, %v2306_v17  ;;  %3842 = vmatpush3.bf16.msra.mxu1 %v4265_v59  ;;  %v1514_v33 = vsel %vm4793_vm6, %v1509_v21, %v1513_v10  ;;  %v4849_v59 = vld [vmem:[#allocation8 + $0x1b8] sm:$0xff]  }
 0x17a   : > { %v3458_v25 = vpack.c.bf16 %v650_v18, %v649_v41  ;;  %v4835_v29 = vcombine.low %v2304_v22, %v2307_v23  ;;  %3843 = vmatprep.subr.bf16.mxu1 %v4267_v14  ;;  %v581_v32 = vadd.f32 %v4766_v42, %v580_v20  ;;  %v4276_v18 = vld [vmem:[#allocation8 + $0x88] sm:$0xff]  }
 0x17b   : > { %v1519_v26 = vrot.slane %v1518_v19, 4  ;;  %v3773_v30 = vpop.f32.mrf.mxu0  ;;  %v4837_v31 = vld [vmem:[#allocation2 + $0x30] sm:$0xff]  }
 0x17c   : > { %3541 = vst [vmem:[#allocation2 + $0x38] sm:$0xff] %v3458_v25   ;;  %v1408_v35 = vld [vmem:[#allocation2 + $0x30] sm:$0xf]  ;;  %v1409_v36 = vld [vmem:[#allocation2 + $0x34] sm:$0xf]  ;;  %3996 = vmatpush3.bf16.msra.mxu0 %v4266_v8  ;;  %3820 = vmatmul.mubr.bf16.gmra.mxu1 %v4837_v31  ;;  %v651_v61 = vmax.f32 %v581_v32, 0.0 }
 0x17d   : > { %v1524_v34 = vsel %vm4793_vm6, %v1519_v26, %v1523_v27  ;;  %v583_v37 = vpop.f32.mrf.mxu0  ;;  %v1526_v39 = vshrl.u32 %v1408_v35, 16  ;;  %v1529_v43 = vshll.u32 %v1408_v35, 16  ;;  %v1535_v46 = vshll.u32 %v1409_v36, 16  ;;  %3997 = vmatprep.subr.bf16.mxu0 %v4270_v40  ;;  %3844 = vmatpush3.bf16.msra.mxu1 %v4267_v14  ;;  %v2247_v51 = vld [vmem:[#allocation2 + $0x30] sm:$0xe] }
 0x17e   : > { %v4845_v38 = vcombine.low %v1514_v33, %v1524_v34  ;;  %v584_v48 = vadd.f32 %v4766_v42, %v583_v37  ;;  %v1539_v49 = vshrl.u32 %v1409_v36, 16  ;;  %3845 = vmatprep.subr.bf16.mxu1 %v4271_v28  ;;  %v2310_v60 = vrot.slane %v1409_v36, 5  ;;  %v4278_v36 = vld [vmem:[#allocation8 + $0x80] sm:$0xff]  }
 0x17f   : > { %v3774_v54 = vpop.f32.mrf.mxu0  ;;  %v1528_v55 = vrot.slane %v1526_v39, 4  ;;  %v1531_v56 = vrot.slane %v1529_v43, 5  ;;  %v1537_v57 = vrot.slane %v1535_v46, 5  ;;  %v3311_v5 = vrot.slane %v2247_v51, 9 }
 0x180   : > { %3947 = vmatprep.mubr.bf16.mxu0 %v4845_v38  ;;  %v652_v63 = vmax.f32 %v584_v48, 0.0  ;;  %v1541_v0 = vrot.slane %v1539_v49, 4  ;;  %3998 = vmatpush3.bf16.msra.mxu0 %v4270_v40  ;;  %v2312_v10 = vrot.slane %v2310_v60, 4 }
 0x181   : > { %v588_v2 = vpop.f32.mrf.mxu0  ;;  %v1532_v3 = vor.u32 %v1531_v56, %v1528_v55  ;;  %3999 = vmatprep.subr.bf16.mxu0 %v4272_v47  ;;  %3846 = vmatpush3.bf16.msra.mxu1 %v4271_v28  ;;  %v2311_v19 = vsel %vm4783_vm5, %v3311_v5, %v2310_v60  ;;  %v4877_v56 = vld [vmem:[#allocation8 + $0x238] sm:$0xff]  }
 0x182   : > { %v3463_v6 = vpack.c.bf16 %v652_v63, %v651_v61  ;;  %v1542_v7 = vor.u32 %v1541_v0, %v1537_v57  ;;  %3863 = vmatprep.subr.bf16.mxu1 %v4849_v59  ;;  %v589_v11 = vadd.f32 %v4766_v42, %v588_v2 }
 0x183   : > { %v3777_v8 = vpop.f32.mrf.mxu0  ;;  %v1410_v9 = vld [vmem:[#allocation2 + $0x38] sm:$0x1]  ;;  %v1533_v12 = vrot.slane %v1532_v3, 4  ;;  %v1411_v14 = vld [vmem:[#allocation2 + $0x3c] sm:$0xf] }
 0x184   : > { %3542 = vst [vmem:[#allocation2 + $0x40] sm:$0xff] %v3463_v6   ;;  %v1545_v13 = vshll.u32 %v1410_v9, 16  ;;  %4000 = vmatpush3.bf16.msra.mxu0 %v4272_v47  ;;  %v2313_v15 = vrot.slane %v1410_v9, 5  ;;  %v1550_v17 = vshrl.u32 %v1411_v14, 16  ;;  %v1553_v41 = vshll.u32 %v1411_v14, 16 }
 0x185   : > { %v591_v16 = vpop.f32.mrf.mxu0  ;;  %4001 = vmatprep.subr.bf16.mxu0 %v4274_v4  ;;  %v1543_v21 = vrot.slane %v1542_v7, 4  ;;  %v653_v26 = vmax.f32 %v589_v11, 0.0  ;;  %v1538_v28 = vsel %vm4793_vm6, %v1533_v12, %v1537_v57 }
 0x186   : > { %v592_v20 = vadd.f32 %v4766_v42, %v591_v16  ;;  %v1547_v40 = vrot.slane %v1545_v13, 5  ;;  %v2314_v22 = vsel %vm4783_vm5, %v2312_v10, %v2313_v15  ;;  %v1552_v34 = vrot.slane %v1550_v17, 4 }
 0x187   : > { %v3778_v23 = vpop.f32.mrf.mxu0  ;;  %v4858_v25 = vcombine.low %v2311_v19, %v2314_v22  ;;  %v1555_v35 = vrot.slane %v1553_v41, 5 }
 0x188   : > { %v654_v27 = vmax.f32 %v592_v20, 0.0  ;;  %v1548_v30 = vsel %vm4793_vm6, %v1543_v21, %v1547_v40  ;;  %4002 = vmatpush3.bf16.msra.mxu0 %v4274_v4 }
 0x189   : > { %v596_v32 = vpop.f32.mrf.mxu0  ;;  %v4864_v33 = vcombine.low %v1538_v28, %v1548_v30  ;;  %4003 = vmatprep.subr.bf16.mxu0 %v4276_v18  ;;  %v1556_v55 = vor.u32 %v1555_v35, %v1552_v34 }
 0x18a   : > { %v3468_v37 = vpack.c.bf16 %v654_v27, %v653_v26  ;;  %v597_v47 = vadd.f32 %v4766_v42, %v596_v32 }
 0x18b   : > { %v3781_v39 = vpop.f32.mrf.mxu0  ;;  %3948 = vmatmul.mubr.bf16.gmra.mxu0 %v4864_v33  ;;  %v4867_v43 = vld [vmem:[#allocation2 + $0x3c] sm:$0xff]   ;;  %v4872_v48 = vld [vmem:[#allocation2 + $0x44] sm:$0x1]  ;;  %v1557_v7 = vrot.slane %v1556_v55, 4 }
 0x18c   : > { %v4869_v46 = vld [vmem:[#allocation2 + $0x40] sm:$0xf]  ;;  %3543 = vst [vmem:[#allocation2 + $0x48] sm:$0xff] %v3468_v37   ;;  %4004 = vmatpush3.bf16.msra.mxu0 %v4276_v18  ;;  %3823 = vmatprep.mubr.bf16.mxu1 %v4867_v43  ;;  %v1569_v63 = vshll.u32 %v4872_v48, 16  ;;  %v655_v2 = vmax.f32 %v597_v47, 0.0 }
 0x18d   : > { %v1559_v49 = vshll.u32 %v4869_v46, 16  ;;  %v1563_v51 = vshrl.u32 %v4869_v46, 16  ;;  %v599_v54 = vpop.f32.mrf.mxu0  ;;  %4005 = vmatprep.subr.bf16.mxu0 %v4278_v36 }
 0x18e   : > { %v600_v57 = vadd.f32 %v4766_v42, %v599_v54  ;;  %v1571_v9 = vrot.slane %v1569_v63, 5 }
 0x18f   : > { %v1561_v60 = vrot.slane %v1559_v49, 5  ;;  %v1565_v61 = vrot.slane %v1563_v51, 4  ;;  %v3782_v0 = vpop.f32.mrf.mxu0 }
 0x190   : > { %v656_v3 = vmax.f32 %v600_v57, 0.0  ;;  %4006 = vmatpush3.bf16.msra.mxu0 %v4278_v36 }
 0x191   : > { %v1566_v4 = vor.u32 %v1565_v61, %v1561_v60  ;;  %v604_v5 = vpop.f32.mrf.mxu0  ;;  %4055 = vmatprep.subr.bf16.mxu0 %v4877_v56  ;;  %v1562_v13 = vsel %vm4793_vm6, %v1557_v7, %v1561_v60 }
 0x192   : > { %v3473_v6 = vpack.c.bf16 %v656_v3, %v655_v2  ;;  %v605_v12 = vadd.f32 %v4766_v42, %v604_v5 }
 0x193   : > { %v1567_v8 = vrot.slane %v1566_v4, 4  ;;  %v3785_v10 = vpop.f32.mrf.mxu0  ;;  %v4882_v11 = vld [vmem:[#allocation2 + $0x48] sm:$0xff]  }
 0x194   : > { %3544 = vst [vmem:[#allocation2 + $0x50] sm:$0xff] %v3473_v6   ;;  %v1414_v15 = vld [vmem:[#allocation2 + $0x48] sm:$0xf]  ;;  %v4889_v16 = vld [vmem:[#allocation2 + $0x4c] sm:$0xf]  ;;  %3824 = vmatmul.mubr.bf16.gmra.mxu1 %v4882_v11  ;;  %v657_v28 = vmax.f32 %v605_v12, 0.0 }
 0x195   : > { %v1572_v14 = vsel %vm4793_vm6, %v1567_v8, %v1571_v9  ;;  %v607_v17 = vpop.f32.mrf.mxu0  ;;  %v1574_v18 = vshrl.u32 %v1414_v15, 16  ;;  %v1577_v19 = vshll.u32 %v1414_v15, 16  ;;  %v1583_v20 = vshll.u32 %v4889_v16, 16 }
 0x196   : > { %v4892_v41 = vcombine.low %v1562_v13, %v1572_v14  ;;  %v608_v21 = vadd.f32 %v4766_v42, %v607_v17  ;;  %v1587_v40 = vshrl.u32 %v4889_v16, 16 }
 0x197   : > { %v3786_v22 = vpop.f32.mrf.mxu0  ;;  %v1576_v23 = vrot.slane %v1574_v18, 4  ;;  %v1579_v26 = vrot.slane %v1577_v19, 5  ;;  %v1585_v27 = vrot.slane %v1583_v20, 5 }
 0x198   : > { %3951 = vmatprep.mubr.bf16.mxu0 %v4892_v41  ;;  %v658_v30 = vmax.f32 %v608_v21, 0.0  ;;  %v1589_v32 = vrot.slane %v1587_v40, 4 }
 0x199   : > { %v612_v34 = vpop.f32.mrf.mxu0  ;;  %v1580_v35 = vor.u32 %v1579_v26, %v1576_v23 }
 0x19a   : > { %v3478_v36 = vpack.c.bf16 %v658_v30, %v657_v28  ;;  %v1590_v37 = vor.u32 %v1589_v32, %v1585_v27  ;;  %v613_v49 = vadd.f32 %v4766_v42, %v612_v34 }
 0x19b   : > { %v3789_v39 = vpop.f32.mrf.mxu0  ;;  %v4898_v47 = vld [vmem:[#allocation2 + $0x50] sm:$0x1]  ;;  %v1581_v51 = vrot.slane %v1580_v35, 4  ;;  %v1417_v55 = vld [vmem:[#allocation2 + $0x54] sm:$0xf] }
 0x19c   : > { %3545 = vst [vmem:[#allocation2 + $0x58] sm:$0xff] %v3478_v36   ;;  %v1593_v54 = vshll.u32 %v4898_v47, 16  ;;  %v1598_v60 = vshrl.u32 %v1417_v55, 16  ;;  %v1601_v61 = vshll.u32 %v1417_v55, 16  ;;  %v1591_v0 = vrot.slane %v1590_v37, 4 }
 0x19d   : > { %v615_v57 = vpop.f32.mrf.mxu0  ;;  %v659_v4 = vmax.f32 %v613_v49, 0.0  ;;  %v1586_v6 = vsel %vm4793_vm6, %v1581_v51, %v1585_v27 }
 0x19e   : > { %v616_v63 = vadd.f32 %v4766_v42, %v615_v57  ;;  %v1595_v2 = vrot.slane %v1593_v54, 5  ;;  %v1600_v10 = vrot.slane %v1598_v60, 4  ;;  %v1603_v12 = vrot.slane %v1601_v61, 5  ;;  %v4269_v60 = vld [vmem:[#allocation2] sm:$0xff]  }
 0x19f   : > { %v3790_v3 = vpop.f32.mrf.mxu0 }
 0x1a0   : > { %v660_v5 = vmax.f32 %v616_v63, 0.0  ;;  %v1596_v7 = vsel %vm4793_vm6, %v1591_v0, %v1595_v2  ;;  %v1604_v23 = vor.u32 %v1603_v12, %v1600_v10  ;;  %v4932_v10 = vld [vmem:[#allocation2 + $0x4] sm:$0xf] }
 0x1a1   : > { %v620_v8 = vpop.f32.mrf.mxu0  ;;  %v4907_v9 = vcombine.low %v1586_v6, %v1596_v7 }
 0x1a2   : > { %v3483_v13 = vpack.c.bf16 %v660_v5, %v659_v4  ;;  %v621_v14 = vadd.f32 %v4766_v42, %v620_v8  ;;  %v1605_v36 = vrot.slane %v1604_v23, 4  ;;  %v4936_v23 = vld [vmem:[#allocation2 + $0x8] sm:$0x1] }
 0x1a3   : > { %v3793_v15 = vpop.f32.mrf.mxu0  ;;  %3952 = vmatmul.mubr.bf16.gmra.mxu0 %v4907_v9  ;;  %v4911_v17 = vld [vmem:[#allocation2 + $0x54] sm:$0xff]   ;;  %v4915_v19 = vld [vmem:[#allocation2 + $0x5c] sm:$0x1] }
 0x1a4   : > { %v4913_v18 = vld [vmem:[#allocation2 + $0x58] sm:$0xf]  ;;  %3546 = vst [vmem:[#allocation2 + $0x60] sm:$0xff] %v3483_v13   ;;  %v661_v40 = vmax.f32 %v621_v14, 0.0  ;;  %3827 = vmatprep.mubr.bf16.mxu1 %v4911_v17  ;;  %v1617_v30 = vshll.u32 %v4915_v19, 16 }
 0x1a5   : > { %v1607_v20 = vshll.u32 %v4913_v18, 16  ;;  %v1611_v21 = vshrl.u32 %v4913_v18, 16  ;;  %v623_v22 = vpop.f32.mrf.mxu0 }
 0x1a6   : > { %v624_v26 = vadd.f32 %v4766_v42, %v623_v22  ;;  %v1619_v51 = vrot.slane %v1617_v30, 5  ;;  %v2282_v30 = vrot.slane %v4932_v10, 5 }
 0x1a7   : > { %v1609_v27 = vrot.slane %v1607_v20, 5  ;;  %v1613_v28 = vrot.slane %v1611_v21, 4  ;;  %v3794_v32 = vpop.f32.mrf.mxu0 }
 0x1a8   : > { %v662_v34 = vmax.f32 %v624_v26, 0.0 }
 0x1a9   : > { %v1614_v35 = vor.u32 %v1613_v28, %v1609_v27  ;;  %v628_v37 = vpop.f32.mrf.mxu0  ;;  %v1610_v61 = vsel %vm4793_vm6, %v1605_v36, %v1609_v27 }
 0x1aa   : > { %v3488_v39 = vpack.c.bf16 %v662_v34, %v661_v40  ;;  %v629_v54 = vadd.f32 %v4766_v42, %v628_v37  ;;  %v2243_v34 = vld [vmem:[#allocation2] sm:$0xe] }
 0x1ab   : > { %v1615_v49 = vrot.slane %v1614_v35, 4  ;;  %v4923_v55 = vld [vmem:[#allocation2 + $0x60] sm:$0xff]   ;;  %v3797_v57 = vpop.f32.mrf.mxu0 }
 0x1ac   : > { %3547 = vst [vmem:[#allocation2 + $0x68] sm:$0xff] %v3488_v39   ;;  %v1420_v0 = vld [vmem:[#allocation2 + $0x60] sm:$0xf]  ;;  %v1421_v2 = vld [vmem:[#allocation2 + $0x64] sm:$0xf]  ;;  %3828 = vmatmul.mubr.bf16.gmra.mxu1 %v4923_v55  ;;  %v663_v12 = vmax.f32 %v629_v54, 0.0 }
 0x1ad   : > { %v1620_v63 = vsel %vm4793_vm6, %v1615_v49, %v1619_v51  ;;  %v1832_v4 = vshrl.u32 %v1420_v0, 16  ;;  %v1835_v5 = vshll.u32 %v1420_v0, 16  ;;  %v1841_v6 = vshll.u32 %v1421_v2, 16  ;;  %v631_v7 = vpop.f32.mrf.mxu0  ;;  %3847 = vmatprep.mubr.bf16.mxu1 %v4269_v60  ;;  %v2251_v40 = vld [vmem:[#allocation2 + $0x60] sm:$0xe] }
 0x1ae   : > { %v4930_v3 = vcombine.low %v1610_v61, %v1620_v63  ;;  %v1845_v8 = vshrl.u32 %v1421_v2, 16  ;;  %v632_v13 = vadd.f32 %v4766_v42, %v631_v7  ;;  %v2551_v27 = vrot.slane %v1421_v2, 5  ;;  %v4275_v42 = vld [vmem:[#allocation8 + $0x1b0] sm:$0xff]  }
 0x1af   : > { %v1834_v14 = vrot.slane %v1832_v4, 4  ;;  %v1837_v15 = vrot.slane %v1835_v5, 5  ;;  %v1843_v20 = vrot.slane %v1841_v6, 5  ;;  %v3798_v21 = vpop.f32.mrf.mxu0  ;;  %v3331_v36 = vrot.slane %v2251_v40, 9  ;;  %v4277_v6 = vld [vmem:[#allocation8 + $0x1a8] sm:$0xff]  }
 0x1b0   : > { %3955 = vmatprep.mubr.bf16.mxu0 %v4930_v3  ;;  %v1847_v22 = vrot.slane %v1845_v8, 4  ;;  %v664_v26 = vmax.f32 %v632_v13, 0.0  ;;  %v2285_v39 = vrot.slane %v4936_v23, 5  ;;  %v2553_v54 = vrot.slane %v2551_v27, 4  ;;  %v4283_v21 = vld [vmem:[#allocation8 + $0x190] sm:$0xff]   ;;  %v4969_v40 = vld [vmem:[#allocation8 + $0x228] sm:$0xff]  }
 0x1b1   : > { %v1838_v28 = vor.u32 %v1837_v15, %v1834_v14  ;;  %v3307_v60 = vrot.slane %v2243_v34, 9  ;;  %v2284_v61 = vrot.slane %v2282_v30, 4  ;;  %v2552_v2 = vsel %vm4783_vm5, %v3331_v36, %v2551_v27  ;;  %v4279_v14 = vld [vmem:[#allocation8 + $0x1a0] sm:$0xff]   ;;  %v4281_v15 = vld [vmem:[#allocation8 + $0x198] sm:$0xff]  }
 0x1b2   : > { %v1848_v32 = vor.u32 %v1847_v22, %v1843_v20  ;;  %v3493_v35 = vpack.c.bf16 %v664_v26, %v663_v12  ;;  %v2317_v22 = vrot.slane %v4869_v46, 5  ;;  %v4285_v26 = vld [vmem:[#allocation8 + $0x188] sm:$0xff]   ;;  %v4975_v27 = vld [vmem:[#allocation8 + $0x220] sm:$0xff]   ;;  %v2327_v46 = vrot.slane %v4898_v47, 5 }
 0x1b3   : > { %v1422_v37 = vld [vmem:[#allocation2 + $0x68] sm:$0x1]  ;;  %v1839_v49 = vrot.slane %v1838_v28, 4  ;;  %v2286_v5 = vsel %vm4783_vm5, %v2284_v61, %v2285_v39  ;;  %v2283_v12 = vsel %vm4783_vm5, %v3307_v60, %v2282_v30  ;;  %v2324_v28 = vrot.slane %v4889_v16, 5  ;;  %v4985_v16 = vld [vmem:[#allocation8 + $0x218] sm:$0xff]   ;;  %v5001_v60 = vld [vmem:[#allocation8 + $0x210] sm:$0xff]  }
 0x1b4   : > { %v1851_v51 = vshll.u32 %v1422_v37, 16  ;;  %3548 = vst [vmem:[#allocation2 + $0x70] sm:$0xff] %v3493_v35   ;;  %v2554_v57 = vrot.slane %v1422_v37, 5  ;;  %3848 = vmatmul.mubr.bf16.vlgmr.msra.gmra.mxu1 %v4777_v24  ;;  %v1849_v63 = vrot.slane %v1848_v32, 4  ;;  %v3315_v13 = vcombine.low %v2283_v12, %v2286_v5  ;;  %v2249_v32 = vld [vmem:[#allocation2 + $0x48] sm:$0xe] }
 0x1b5   : > { %3864 = vmatpush3.bf16.msra.mxu1 %v4849_v59  ;;  %3851 = vmatprep.mubr.bf16.mxu1 %v4797_v58  ;;  %v1844_v59 = vsel %vm4793_vm6, %v1839_v49, %v1843_v20  ;;  %v4962_v20 = vld [vmem:[#allocation8 + $0x230] sm:$0xff]   ;;  %v2319_v30 = vrot.slane %v2317_v22, 4  ;;  %v4287_v34 = vld [vmem:[#allocation8 + $0x180] sm:$0xff]   ;;  %v2320_v36 = vrot.slane %v4872_v48, 5  ;;  %v2326_v37 = vrot.slane %v2324_v28, 4 }
 0x1b6   : > { %v1853_v0 = vrot.slane %v1851_v51, 5  ;;  %v2555_v4 = vsel %vm4783_vm5, %v2553_v54, %v2554_v57  ;;  %3865 = vmatprep.subr.bf16.mxu1 %v4275_v42  ;;  %v2248_v35 = vld [vmem:[#allocation2 + $0x3c] sm:$0xe]  ;;  %v2331_v49 = vrot.slane %v4913_v18, 5  ;;  %v4289_v51 = vld [vmem:[#allocation8 + $0x78] sm:$0xff]   ;;  %v5022_v12 = vld [vmem:[#allocation8 + $0x200] sm:$0xff]  }
 0x1b7   : > { %v4949_v24 = vcombine.low %v2552_v2, %v2555_v4  ;;  %v3312_v39 = vrot.slane %v2248_v35, 9  ;;  %v2321_v47 = vsel %vm4783_vm5, %v2319_v30, %v2320_v36  ;;  %v2328_v48 = vsel %vm4783_vm5, %v2326_v37, %v2327_v46  ;;  %v5011_v4 = vld [vmem:[#allocation8 + $0x208] sm:$0xff]  }
 0x1b8   : > { %v1854_v7 = vsel %vm4793_vm6, %v1849_v63, %v1853_v0  ;;  %v2333_v61 = vrot.slane %v2331_v49, 4  ;;  %v4291_v63 = vld [vmem:[#allocation8 + $0x70] sm:$0xff]   ;;  %v2250_v0 = vld [vmem:[#allocation2 + $0x54] sm:$0xe]  ;;  %v2334_v2 = vrot.slane %v4915_v19, 5 }
 0x1b9   : > { %v4955_v8 = vcombine.low %v1844_v59, %v1854_v7  ;;  %3866 = vmatpush3.bf16.msra.mxu1 %v4275_v42  ;;  %v3313_v42 = vrot.slane %v2249_v32, 9  ;;  %v2318_v54 = vsel %vm4783_vm5, %v3312_v39, %v2317_v22  ;;  %v3314_v5 = vrot.slane %v2250_v0, 9  ;;  %v4293_v59 = vld [vmem:[#allocation8 + $0x68] sm:$0xff]   ;;  %v1396_v7 = vld [vmem:[#allocation2] sm:$0xf]  ;;  %v4310_v0 = vld [vmem:[#allocation8 + $0x170] sm:$0xff]  }
 0x1ba   : > { %3867 = vmatprep.subr.bf16.mxu1 %v4277_v6  ;;  %v4996_v57 = vcombine.low %v2318_v54, %v2321_v47  ;;  %v4296_v22 = vld [vmem:[#allocation8 + $0x58] sm:$0xff]   ;;  %v4298_v46 = vld [vmem:[#allocation8 + $0x48] sm:$0xff]  }
 0x1bb   : > { %3956 = vmatmul.mubr.bf16.gmra.mxu0 %v4955_v8  ;;  %v2332_v19 = vsel %vm4783_vm5, %v3314_v5, %v2331_v49  ;;  %v4299_v37 = vld [vmem:[#allocation2 + $0x6c] sm:$0xff]   ;;  %v4302_v49 = vld [vmem:[#allocation8 + $0x1f0] sm:$0xff]   ;;  %v4305_v54 = vld [vmem:[#allocation8 + $0x1d8] sm:$0xff]  }
 0x1bc   : > { %4007 = vmatprep.mubr.bf16.mxu0 %v3315_v13  ;;  %3852 = vmatmul.mubr.bf16.gmra.mxu1 %v4825_v62  ;;  %v1430_v13 = vshrl.u32 %v1396_v7, 16  ;;  %v4311_v5 = vld [vmem:[#allocation8 + $0x168] sm:$0xff]  }
 0x1bd   : > { %3868 = vmatpush3.bf16.msra.mxu1 %v4277_v6  ;;  %3855 = vmatprep.mubr.bf16.mxu1 %v4837_v31  ;;  %v2335_v6 = vsel %vm4783_vm5, %v2333_v61, %v2334_v2  ;;  %v4308_v61 = vld [vmem:[#allocation8 + $0x1c0] sm:$0xff]  }
 0x1be   : > { %3869 = vmatprep.subr.bf16.mxu1 %v4279_v14  ;;  %v1423_v2 = vld [vmem:[#allocation2 + $0x6c] sm:$0xf] }
 0x1c1   : > { %3870 = vmatpush3.bf16.msra.mxu1 %v4279_v14  ;;  %v1433_v14 = vshll.u32 %v1396_v7, 16 }
 0x1c2   : > { %3871 = vmatprep.subr.bf16.mxu1 %v4281_v15 }
 0x1c3   : > { %4008 = vmatmul.mubr.bf16.vlgmr.msra.gmra.mxu0 %v4791_v50 }
 0x1c4   : > { %4011 = vmatprep.mubr.bf16.mxu0 %v4816_v45  ;;  %4056 = vmatpush3.bf16.msra.mxu0 %v4877_v56 }
 0x1c5   : > { %3856 = vmatmul.mubr.bf16.gmra.mxu1 %v4867_v43  ;;  %4057 = vmatprep.subr.bf16.mxu0 %v4962_v20 }
 0x1c6   : > { %3872 = vmatpush3.bf16.msra.mxu1 %v4281_v15  ;;  %3859 = vmatprep.mubr.bf16.mxu1 %v4882_v11  ;;  %v1439_v15 = vshll.u32 %v4932_v10, 16 }
 0x1c7   : > { %3873 = vmatprep.subr.bf16.mxu1 %v4283_v21 }
 0x1c8   : > { %4058 = vmatpush3.bf16.msra.mxu0 %v4962_v20  ;;  %v1441_v30 = vrot.slane %v1439_v15, 5 }
 0x1c9   : > { %4059 = vmatprep.subr.bf16.mxu0 %v4969_v40 }
 0x1ca   : > { %3874 = vmatpush3.bf16.msra.mxu1 %v4283_v21  ;;  %v1443_v21 = vshrl.u32 %v4932_v10, 16  ;;  %v1449_v10 = vshll.u32 %v4936_v23, 16 }
 0x1cb   : > { %4012 = vmatmul.mubr.bf16.gmra.mxu0 %v4835_v29  ;;  %3875 = vmatprep.subr.bf16.mxu1 %v4285_v26 }
 0x1cc   : > { %4015 = vmatprep.mubr.bf16.mxu0 %v4858_v25  ;;  %4060 = vmatpush3.bf16.msra.mxu0 %v4969_v40  ;;  %v1445_v32 = vrot.slane %v1443_v21, 4  ;;  %v1425_v21 = vld [vmem:[#allocation2 + $0x74] sm:$0x1] }
 0x1cd   : > { %3860 = vmatmul.mubr.bf16.gmra.mxu1 %v4911_v17  ;;  %4061 = vmatprep.subr.bf16.mxu0 %v4975_v27 }
 0x1ce   : > { %3876 = vmatpush3.bf16.msra.mxu1 %v4285_v26  ;;  %3879 = vmatprep.mubr.bf16.mxu1 %v4797_v58  ;;  %v2325_v58 = vsel %vm4783_vm5, %v3313_v42, %v2324_v28  ;;  %v1432_v26 = vrot.slane %v1430_v13, 4  ;;  %v1435_v28 = vrot.slane %v1433_v14, 5  ;;  %v1446_v35 = vor.u32 %v1445_v32, %v1441_v30 }
 0x1cf   : > { %3877 = vmatprep.subr.bf16.mxu1 %v4287_v34  ;;  %v5003_v18 = vcombine.low %v2325_v58, %v2328_v48  ;;  %v4303_v48 = vld [vmem:[#allocation8 + $0x1e8] sm:$0xff]   ;;  %v4306_v58 = vld [vmem:[#allocation8 + $0x1d0] sm:$0xff]  }
 0x1d0   : > { %4062 = vmatpush3.bf16.msra.mxu0 %v4975_v27  ;;  %v1447_v42 = vrot.slane %v1446_v35, 4 }
 0x1d1   : > { %4063 = vmatprep.subr.bf16.mxu0 %v4985_v16 }
 0x1d2   : > { %3878 = vmatpush3.bf16.msra.mxu1 %v4287_v34  ;;  %v1436_v34 = vor.u32 %v1435_v28, %v1432_v26  ;;  %v2057_v28 = vshll.u32 %v1425_v21, 16 }
 0x1d3   : > { %4016 = vmatmul.mubr.bf16.gmra.mxu0 %v4996_v57  ;;  %3895 = vmatprep.subr.bf16.mxu1 %v4289_v51 }
 0x1d4   : > { %4019 = vmatprep.mubr.bf16.mxu0 %v5003_v18  ;;  %4064 = vmatpush3.bf16.msra.mxu0 %v4985_v16  ;;  %v1437_v36 = vrot.slane %v1436_v34, 4 }
 0x1d5   : > { %3880 = vmatmul.mubr.bf16.vlgmr.msra.gmra.mxu1 %v4825_v62  ;;  %4065 = vmatprep.subr.bf16.mxu0 %v5001_v60  ;;  %v5019_v62 = vcombine.low %v2332_v19, %v2335_v6  ;;  %v5055_v6 = vld [vmem:[#allocation2 + $0x70] sm:$0xf]  ;;  %v2041_v19 = vshll.u32 %v1423_v2, 16 }
 0x1d6   : > { %3896 = vmatpush3.bf16.msra.mxu1 %v4289_v51  ;;  %3883 = vmatprep.mubr.bf16.mxu1 %v4837_v31  ;;  %v4295_v31 = vld [vmem:[#allocation8 + $0x60] sm:$0xff]   ;;  %v1442_v39 = vsel %vm4793_vm6, %v1437_v36, %v1441_v30  ;;  %v2047_v7 = vshll.u32 %v5055_v6, 16  ;;  %v4314_v30 = vld [vmem:[#allocation8 + $0x150] sm:$0xff]  }
 0x1d7   : > { %3897 = vmatprep.subr.bf16.mxu1 %v4291_v63  ;;  %v4304_v51 = vld [vmem:[#allocation8 + $0x1e0] sm:$0xff]   ;;  %v2043_v14 = vrot.slane %v2041_v19, 5 }
 0x1d8   : > { %4066 = vmatpush3.bf16.msra.mxu0 %v5001_v60 }
 0x1d9   : > { %4067 = vmatprep.subr.bf16.mxu0 %v5011_v4 }
 0x1da   : > { %3898 = vmatpush3.bf16.msra.mxu1 %v4291_v63  ;;  %v4309_v63 = vld [vmem:[#allocation8 + $0x178] sm:$0xff]  }
 0x1db   : > { %4020 = vmatmul.mubr.bf16.gmra.mxu0 %v5019_v62  ;;  %3899 = vmatprep.subr.bf16.mxu1 %v4293_v59 }
 0x1dc   : > { %4068 = vmatpush3.bf16.msra.mxu0 %v5011_v4  ;;  %4071 = vmatprep.mubr.bf16.mxu0 %v4816_v45 }
 0x1dd   : > { %3884 = vmatmul.mubr.bf16.gmra.mxu1 %v4867_v43  ;;  %4069 = vmatprep.subr.bf16.mxu0 %v5022_v12  ;;  %v4297_v43 = vld [vmem:[#allocation8 + $0x50] sm:$0xff]  }
 0x1de   : > { %3900 = vmatpush3.bf16.msra.mxu1 %v4293_v59  ;;  %3887 = vmatprep.mubr.bf16.mxu1 %v4882_v11  ;;  %v1451_v11 = vrot.slane %v1449_v10, 5  ;;  %v2038_v59 = vshrl.u32 %v1423_v2, 16 }
 0x1df   : > { %3901 = vmatprep.subr.bf16.mxu1 %v4295_v31 }
 0x1e0   : > { %4070 = vmatpush3.bf16.msra.mxu0 %v5022_v12  ;;  %v1452_v23 = vsel %vm4793_vm6, %v1447_v42, %v1451_v11  ;;  %v2040_v13 = vrot.slane %v2038_v59, 4  ;;  %v4316_v11 = vld [vmem:[#allocation8 + $0x140] sm:$0xff]  }
 0x1e1   : > { %v3273_v47 = vcombine.low %v1442_v39, %v1452_v23 }
 0x1e2   : > { %3902 = vmatpush3.bf16.msra.mxu1 %v4295_v31  ;;  %v4312_v31 = vld [vmem:[#allocation8 + $0x160] sm:$0xff]  }
 0x1e3   : > { %4072 = vmatmul.mubr.bf16.vlgmr.msra.gmra.mxu0 %v4835_v29  ;;  %3903 = vmatprep.subr.bf16.mxu1 %v4296_v22 }
 0x1e4   : > { %4075 = vmatprep.mubr.bf16.mxu0 %v4858_v25 }
 0x1e5   : > { %3888 = vmatmul.mubr.bf16.gmra.mxu1 %v4911_v17  ;;  %v4300_v17 = vld [vmem:[#allocation8 + $0x40] sm:$0xff]  }
 0x1e6   : > { %3904 = vmatpush3.bf16.msra.mxu1 %v4296_v22  ;;  %3891 = vmatprep.mubr.bf16.mxu1 %v4923_v55  ;;  %v4301_v55 = vld [vmem:[#allocation8 + $0x1f8] sm:$0xff]   ;;  %v2044_v22 = vor.u32 %v2043_v14, %v2040_v13 }
 0x1e7   : > { %3905 = vmatprep.subr.bf16.mxu1 %v4297_v43 }
 0x1e8   : > { %v2045_v32 = vrot.slane %v2044_v22, 4 }
 0x1ea   : > { %3906 = vmatpush3.bf16.msra.mxu1 %v4297_v43  ;;  %v2059_v43 = vrot.slane %v2057_v28, 5 }
 0x1eb   : > { %4076 = vmatmul.mubr.bf16.gmra.mxu0 %v4996_v57  ;;  %3907 = vmatprep.subr.bf16.mxu1 %v4298_v46 }
 0x1ec   : > { %4079 = vmatprep.mubr.bf16.mxu0 %v5003_v18 }
 0x1ed   : > { %3892 = vmatmul.mubr.bf16.gmra.mxu1 %v4299_v37 }
 0x1ee   : > { %3908 = vmatpush3.bf16.msra.mxu1 %v4298_v46  ;;  %3911 = vmatprep.mubr.bf16.mxu1 %v3273_v47 }
 0x1ef   : > { %3909 = vmatprep.subr.bf16.mxu1 %v4300_v17 }
 0x1f2   : > { %3910 = vmatpush3.bf16.msra.mxu1 %v4300_v17 }
 0x1f3   : > { %4080 = vmatmul.mubr.bf16.gmra.mxu0 %v5019_v62  ;;  %3959 = vmatprep.subr.bf16.mxu1 %v4301_v55 }
 0x1f5   : > { %3912 = vmatmul.mubr.bf16.vlgmr.msra.gmra.mxu1 %v4805_v1  ;;  %v4307_v1 = vld [vmem:[#allocation8 + $0x1c8] sm:$0xff]  }
 0x1f6   : > { %3960 = vmatpush3.bf16.msra.mxu1 %v4301_v55  ;;  %3915 = vmatprep.mubr.bf16.mxu1 %v4822_v53 }
 0x1f7   : > { %3961 = vmatprep.subr.bf16.mxu1 %v4302_v49 }
 0x1fa   : > { %3962 = vmatpush3.bf16.msra.mxu1 %v4302_v49 }
 0x1fb   : > { %3963 = vmatprep.subr.bf16.mxu1 %v4303_v48 }
 0x1fd   : > { %3916 = vmatmul.mubr.bf16.gmra.mxu1 %v4845_v38 }
 0x1fe   : > { %3964 = vmatpush3.bf16.msra.mxu1 %v4303_v48  ;;  %3919 = vmatprep.mubr.bf16.mxu1 %v4864_v33 }
 0x1ff   : > { %3965 = vmatprep.subr.bf16.mxu1 %v4304_v51 }
 0x202   : > { %3966 = vmatpush3.bf16.msra.mxu1 %v4304_v51 }
 0x203   : > { %3967 = vmatprep.subr.bf16.mxu1 %v4305_v54 }
 0x205   : > { %3920 = vmatmul.mubr.bf16.gmra.mxu1 %v4892_v41 }
 0x206   : > { %3968 = vmatpush3.bf16.msra.mxu1 %v4305_v54  ;;  %3923 = vmatprep.mubr.bf16.mxu1 %v4907_v9 }
 0x207   : > { %3969 = vmatprep.subr.bf16.mxu1 %v4306_v58 }
 0x20a   : > { %3970 = vmatpush3.bf16.msra.mxu1 %v4306_v58 }
 0x20b   : > { %3971 = vmatprep.subr.bf16.mxu1 %v4307_v1 }
 0x20d   : > { %3924 = vmatmul.mubr.bf16.gmra.mxu1 %v4930_v3 }
 0x20e   : > { %3972 = vmatpush3.bf16.msra.mxu1 %v4307_v1  ;;  %3975 = vmatprep.mubr.bf16.mxu1 %v4822_v53  ;;  %v2051_v53 = vshrl.u32 %v5055_v6, 16 }
 0x20f   : > { %3973 = vmatprep.subr.bf16.mxu1 %v4308_v61 }
 0x210   : > { %v2053_v15 = vrot.slane %v2051_v53, 4 }
 0x212   : > { %3974 = vmatpush3.bf16.msra.mxu1 %v4308_v61 }
 0x213   : > { %4023 = vmatprep.subr.bf16.mxu1 %v4309_v63 }
 0x215   : > { %3976 = vmatmul.mubr.bf16.vlgmr.msra.gmra.mxu1 %v4845_v38  ;;  %v2049_v38 = vrot.slane %v2047_v7, 5 }
 0x216   : > { %4024 = vmatpush3.bf16.msra.mxu1 %v4309_v63  ;;  %3979 = vmatprep.mubr.bf16.mxu1 %v4864_v33  ;;  %v4313_v33 = vld [vmem:[#allocation8 + $0x158] sm:$0xff]  }
 0x217   : > { %4025 = vmatprep.subr.bf16.mxu1 %v4310_v0  ;;  %v2054_v26 = vor.u32 %v2053_v15, %v2049_v38 }
 0x219   : > { %v2055_v10 = vrot.slane %v2054_v26, 4 }
 0x21a   : > { %4026 = vmatpush3.bf16.msra.mxu1 %v4310_v0 }
 0x21b   : > { %4027 = vmatprep.subr.bf16.mxu1 %v4311_v5  ;;  %v2060_v34 = vsel %vm4793_vm6, %v2055_v10, %v2059_v43 }
 0x21d   : > { %3980 = vmatmul.mubr.bf16.gmra.mxu1 %v4892_v41  ;;  %v4315_v41 = vld [vmem:[#allocation8 + $0x148] sm:$0xff]  }
 0x21e   : > { %4028 = vmatpush3.bf16.msra.mxu1 %v4311_v5  ;;  %3983 = vmatprep.mubr.bf16.mxu1 %v4907_v9  ;;  %v2050_v9 = vsel %vm4793_vm6, %v2045_v32, %v2049_v38 }
 0x21f   : > { %4029 = vmatprep.subr.bf16.mxu1 %v4312_v31  ;;  %v3298_v35 = vcombine.low %v2050_v9, %v2060_v34 }
 0x222   : > { %4030 = vmatpush3.bf16.msra.mxu1 %v4312_v31 }
 0x223   : > { %4031 = vmatprep.subr.bf16.mxu1 %v4313_v33 }
 0x225   : > { %3984 = vmatmul.mubr.bf16.gmra.mxu1 %v4930_v3  ;;  %v2746_v3 = vrot.slane %v1425_v21, 5 }
 0x226   : > { %4032 = vmatpush3.bf16.msra.mxu1 %v4313_v33  ;;  %3987 = vmatprep.mubr.bf16.mxu1 %v4955_v8 }
 0x227   : > { %4033 = vmatprep.subr.bf16.mxu1 %v4314_v30 }
 0x22a   : > { %4034 = vmatpush3.bf16.msra.mxu1 %v4314_v30 }
 0x22b   : > { %4035 = vmatprep.subr.bf16.mxu1 %v4315_v41 }
 0x22d   : > { %3988 = vmatmul.mubr.bf16.gmra.mxu1 %v3298_v35 }
 0x22e   : > { %4036 = vmatpush3.bf16.msra.mxu1 %v4315_v41  ;;  %4039 = vmatprep.mubr.bf16.mxu1 %v4791_v50  ;;  %v5080_v50 = vpop.f32.mrf.mxu1 }
 0x22f   : > { %4037 = vmatprep.subr.bf16.mxu1 %v4316_v11 }
 0x230   : > { %v5086_v52 = vpop.f32.mrf.mxu1 }
 0x232   : > { %4038 = vmatpush3.bf16.msra.mxu1 %v4316_v11 }
 0x233   : > { %4087 = vmatprep.subr.bf16.mxu1 %v4877_v56  ;;  %v5103_v36 = vpop.f32.mrf.mxu0 }
 0x235   : > { %4040 = vmatmul.mubr.bf16.vlgmr.msra.gmra.mxu1 %v4816_v45  ;;  %v2743_v45 = vrot.slane %v5055_v6, 5  ;;  %v5105_v23 = vpop.f32.mrf.mxu0 }
 0x236   : > { %4095 = vmatpush3.bf16.msra.mxu1 %v4877_v56  ;;  %4043 = vmatprep.mubr.bf16.mxu1 %v4835_v29  ;;  %v2252_v29 = vld [vmem:[#allocation2 + $0x6c] sm:$0xe] }
 0x237   : > { %4088 = vmatprep.subr.bf16.mxu1 %v4962_v20  ;;  %v2745_v56 = vrot.slane %v2743_v45, 4  ;;  %v3341_v8 = vrot.slane %v2252_v29, 9  ;;  %v5107_v44 = vpop.f32.mrf.mxu0 }
 0x23a   : > { %4096 = vmatpush3.bf16.msra.mxu1 %v4962_v20 }
 0x23b   : > { %4089 = vmatprep.subr.bf16.mxu1 %v4969_v40 }
 0x23d   : > { %4044 = vmatmul.mubr.bf16.gmra.mxu1 %v4858_v25  ;;  %v5091_v25 = vpop.f32.mrf.mxu1 }
 0x23e   : > { %4097 = vmatpush3.bf16.msra.mxu1 %v4969_v40  ;;  %4047 = vmatprep.mubr.bf16.mxu1 %v4996_v57  ;;  %v2744_v40 = vsel %vm4783_vm5, %v3341_v8, %v2743_v45 }
 0x23f   : > { %4090 = vmatprep.subr.bf16.mxu1 %v4975_v27  ;;  %v1001_v20 = vpop.f32.mrf.mxu1 }
 0x242   : > { %4098 = vmatpush3.bf16.msra.mxu1 %v4975_v27  ;;  %v2747_v27 = vsel %vm4783_vm5, %v2745_v56, %v2746_v3 }
 0x243   : > { %4091 = vmatprep.subr.bf16.mxu1 %v4985_v16  ;;  %v3342_v57 = vcombine.low %v2744_v40, %v2747_v27 }
 0x245   : > { %4048 = vmatmul.mubr.bf16.gmra.mxu1 %v5003_v18 }
 0x246   : > { %4099 = vmatpush3.bf16.msra.mxu1 %v4985_v16  ;;  %4051 = vmatprep.mubr.bf16.mxu1 %v5019_v62  ;;  %v3821_v16 = vpop.f32.mrf.mxu1 }
 0x247   : > { %4092 = vmatprep.subr.bf16.mxu1 %v5001_v60 }
 0x24a   : > { %4100 = vmatpush3.bf16.msra.mxu1 %v5001_v60  ;;  %v1014_v60 = vpop.f32.mrf.mxu1 }
 0x24b   : > { %4093 = vmatprep.subr.bf16.mxu1 %v5011_v4 }
 0x24c   : > { %v3822_v18 = vpop.f32.mrf.mxu1 }
 0x24d   : > { %4052 = vmatmul.mubr.bf16.gmra.mxu1 %v4949_v24 }
 0x24e   : > { %4101 = vmatpush3.bf16.msra.mxu1 %v5011_v4  ;;  %4083 = vmatprep.mubr.bf16.mxu1 %v4949_v24  ;;  %v1017_v62 = vpop.f32.mrf.mxu1 }
 0x24f   : > { %4094 = vmatprep.subr.bf16.mxu1 %v5022_v12 }
 0x252   : > { %4102 = vmatpush3.bf16.msra.mxu1 %v5022_v12  ;;  %v5109_v12 = vpop.f32.mrf.mxu0 }
 0x254   : > { %v3825_v4 = vpop.f32.mrf.mxu1  ;;  %v5111_v49 = vpop.f32.mrf.mxu0 }
 0x255   : > { %4084 = vmatmul.mubr.bf16.vlgmr.msra.gmra.mxu1 %v3342_v57 }
 0x256   : > { %v1030_v46 = vpop.f32.mrf.mxu1  ;;  %v5113_v54 = vpop.f32.mrf.mxu0 }
 0x258   : > { %v3826_v24 = vpop.f32.mrf.mxu1  ;;  %v5115_v63 = vpop.f32.mrf.mxu0 }
 0x25a   : > { %v1033_v42 = vpop.f32.mrf.mxu1  ;;  %v5117_v59 = vpop.f32.mrf.mxu0 }
 0x263   : > { %v5119_v53 = vpop.f32.mrf.mxu0 }
 0x265   : > { %v5121_v15 = vpop.f32.mrf.mxu0 }
 0x267   : > { %v5123_v28 = vpop.f32.mrf.mxu0 }
 0x268   : > { %5425 = vst [vmem:[#allocation18_spill] sm:$0xff] %v5123_v28 }
 0x269   : > { %v5125_v41 = vpop.f32.mrf.mxu0 }
 0x26a   : > { %5426 = vst [vmem:[#allocation19_spill] sm:$0xff] %v5125_v41 }
 0x26c   : > { %v3829_v37 = vpop.f32.mrf.mxu1 }
 0x26e   : > { %v1046_v39 = vpop.f32.mrf.mxu1 }
 0x270   : > { %v3830_v17 = vpop.f32.mrf.mxu1 }
 0x272   : > { %v1049_v47 = vpop.f32.mrf.mxu1 }
 0x274   : > { %v3849_v55 = vpop.f32.mrf.mxu1 }
 0x275   : > { %v1158_v29 = vadd.f32 %v3849_v55, %v5080_v50 }
 0x276   : > { %v1149_v48 = vpop.f32.mrf.mxu1 }
 0x277   : > { %v1150_v8 = vadd.f32 %v1149_v48, %v5086_v52 }
 0x278   : > { %v3850_v51 = vpop.f32.mrf.mxu1 }
 0x27a   : > { %v1152_v58 = vpop.f32.mrf.mxu1 }
 0x27b   : > { %v1153_v1 = vadd.f32 %v1152_v58, %v1001_v20  ;;  %v5127_v35 = vpop.f32.mrf.mxu0 }
 0x27c   : > { %v3853_v61 = vpop.f32.mrf.mxu1  ;;  %5427 = vst [vmem:[#allocation20_spill] sm:$0xff] %v5127_v35 }
 0x27d   : > { %v1174_v0 = vadd.f32 %v3853_v61, %v3821_v16  ;;  %v5131_v20 = vpop.f32.mrf.mxu0  ;;  %v1161_v16 = vadd.f32 %v3850_v51, %v5091_v25 }
 0x27e   : > { %v1165_v2 = vpop.f32.mrf.mxu1  ;;  %5428 = vst [vmem:[#allocation21_spill] sm:$0xff] %v5131_v20 }
 0x27f   : > { %v1166_v5 = vadd.f32 %v1165_v2, %v1014_v60 }
 0x280   : > { %v3854_v6 = vpop.f32.mrf.mxu1 }
 0x281   : > { %v1177_v19 = vadd.f32 %v3854_v6, %v3822_v18  ;;  %v5138_v18 = vpop.f32.mrf.mxu0 }
 0x282   : > { %v1168_v7 = vpop.f32.mrf.mxu1  ;;  %5429 = vst [vmem:[#allocation22_spill] sm:$0xff] %v5138_v18 }
 0x283   : > { %v1169_v31 = vadd.f32 %v1168_v7, %v1017_v62 }
 0x285   : > { %v3857_v13 = vpop.f32.mrf.mxu1 }
 0x286   : > { %v1190_v14 = vadd.f32 %v3857_v13, %v3825_v4 }
 0x287   : > { %v1181_v38 = vpop.f32.mrf.mxu1 }
 0x288   : > { %v1182_v33 = vadd.f32 %v1181_v38, %v1030_v46 }
 0x289   : > { %v3858_v21 = vpop.f32.mrf.mxu1 }
 0x28a   : > { %v1193_v22 = vadd.f32 %v3858_v21, %v3826_v24  ;;  %v5144_v24 = vpop.f32.mrf.mxu0 }
 0x28b   : > { %v1184_v26 = vpop.f32.mrf.mxu1  ;;  %5430 = vst [vmem:[#allocation23_spill] sm:$0xff] %v5144_v24 }
 0x28c   : > { %v1185_v30 = vadd.f32 %v1184_v26, %v1033_v42  ;;  %v5150_v25 = vpop.f32.mrf.mxu0 }
 0x28d   : > { %v3861_v32 = vpop.f32.mrf.mxu1 }
 0x28e   : > { %v1206_v10 = vadd.f32 %v3861_v32, %v3829_v37  ;;  %v5156_v51 = vpop.f32.mrf.mxu0 }
 0x28f   : > { %v1197_v43 = vpop.f32.mrf.mxu1 }
 0x290   : > { %v1198_v9 = vadd.f32 %v1197_v43, %v1046_v39  ;;  %v5162_v2 = vpop.f32.mrf.mxu0 }
 0x291   : > { %v3862_v34 = vpop.f32.mrf.mxu1 }
 0x292   : > { %v1209_v11 = vadd.f32 %v3862_v34, %v3830_v17  ;;  %v5168_v13 = vpop.f32.mrf.mxu0 }
 0x293   : > { %v1200_v45 = vpop.f32.mrf.mxu1 }
 0x294   : > { %v1201_v56 = vadd.f32 %v1200_v45, %v1049_v47 }
 0x295   : > { %v3881_v3 = vpop.f32.mrf.mxu1 }
 0x296   : > { %v5133_v40 = vadd.f32 %v3881_v3, %v1158_v29 }
 0x297   : > { %v1317_v27 = vpop.f32.mrf.mxu1 }
 0x298   : > { %v5136_v57 = vadd.f32 %v1317_v27, %v1150_v8 }
 0x299   : > { %v3882_v60 = vpop.f32.mrf.mxu1 }
 0x29a   : > { %v5140_v62 = vadd.f32 %v3882_v60, %v1161_v16 }
 0x29b   : > { %v1320_v4 = vpop.f32.mrf.mxu1 }
 0x29c   : > { %v5142_v50 = vadd.f32 %v1320_v4, %v1153_v1 }
 0x29d   : > { %v3885_v46 = vpop.f32.mrf.mxu1 }
 0x29e   : > { %v5146_v52 = vadd.f32 %v3885_v46, %v1174_v0 }
 0x29f   : > { %v1333_v42 = vpop.f32.mrf.mxu1 }
 0x2a0   : > { %v5148_v37 = vadd.f32 %v1333_v42, %v1166_v5 }
 0x2a1   : > { %v3886_v39 = vpop.f32.mrf.mxu1 }
 0x2a2   : > { %v5152_v17 = vadd.f32 %v3886_v39, %v1177_v19 }
 0x2a3   : > { %v1336_v47 = vpop.f32.mrf.mxu1 }
 0x2a4   : > { %v5154_v55 = vadd.f32 %v1336_v47, %v1169_v31 }
 0x2a5   : > { %v3889_v48 = vpop.f32.mrf.mxu1 }
 0x2a6   : > { %v5158_v58 = vadd.f32 %v3889_v48, %v1190_v14  ;;  %v5170_v14 = vpop.f32.mrf.mxu0 }
 0x2a7   : > { %v1349_v1 = vpop.f32.mrf.mxu1 }
 0x2a8   : > { %v5160_v61 = vadd.f32 %v1349_v1, %v1182_v33 }
 0x2a9   : > { %v3890_v0 = vpop.f32.mrf.mxu1 }
 0x2aa   : > { %v5164_v5 = vadd.f32 %v3890_v0, %v1193_v22  ;;  %v5176_v22 = vpop.f32.mrf.mxu0 }
 0x2ab   : > { %v1352_v6 = vpop.f32.mrf.mxu1 }
 0x2ac   : > { %v5166_v7 = vadd.f32 %v1352_v6, %v1185_v30  ;;  %v5178_v29 = vpop.f32.mrf.mxu0 }
 0x2ad   : > { %v3893_v19 = vpop.f32.mrf.mxu1  ;;  %5433 = vst [vmem:[#allocation26_spill] sm:$0xff] %v5178_v29 }
 0x2ae   : > { %v1394_v31 = vadd.f32 %v3893_v19, %v1206_v10  ;;  %v5180_v10 = vpop.f32.mrf.mxu0 }
 0x2af   : > { %v1365_v38 = vpop.f32.mrf.mxu1  ;;  %5434 = vst [vmem:[#allocation27_spill] sm:$0xff] %v5180_v10 }
 0x2b0   : > { %v1392_v21 = vadd.f32 %v1365_v38, %v1198_v9  ;;  %v5182_v16 = vpop.f32.mrf.mxu0 }
 0x2b1   : > { %v3894_v26 = vpop.f32.mrf.mxu1  ;;  %5435 = vst [vmem:[#allocation28_spill] sm:$0xff] %v5182_v16 }
 0x2b2   : > { %v5172_v32 = vadd.f32 %v3894_v26, %v1209_v11 }
 0x2b3   : > { %v1368_v33 = vpop.f32.mrf.mxu1 }
 0x2b4   : > { %5431 = vst [vmem:[#allocation24_spill] sm:$0xff] %v5172_v32  ;;  %v5174_v43 = vadd.f32 %v1368_v33, %v1201_v56  ;;  %v5186_v56 = vpop.f32.mrf.mxu0 }
 0x2b5   : > { %v3913_v34 = vpop.f32.mrf.mxu1  ;;  %5436 = vst [vmem:[#allocation29_spill] sm:$0xff] %v5186_v56 }
 0x2b6   : > { %5432 = vst [vmem:[#allocation25_spill] sm:$0xff] %v5174_v43  ;;  %v5192_v42 = vpop.f32.mrf.mxu0 }
 0x2b7   : > { %v1752_v45 = vpop.f32.mrf.mxu1  ;;  %5437 = vst [vmem:[#allocation30_spill] sm:$0xff] %v5192_v42 }
 0x2b8   : > { %v5196_v48 = vpop.f32.mrf.mxu0 }
 0x2b9   : > { %v3914_v30 = vpop.f32.mrf.mxu1  ;;  %5438 = vst [vmem:[#allocation31_spill] sm:$0xff] %v5196_v48 }
 0x2ba   : > { %v5204_v38 = vpop.f32.mrf.mxu0  ;;  %v1818_v41 = vadd.f32 %v3914_v30, %v5140_v62 }
 0x2bb   : > { %v1755_v3 = vpop.f32.mrf.mxu1  ;;  %5442 = vst [vmem:[#allocation35_spill] sm:$0xff] %v5204_v38 }
 0x2bc   : > { %v5208_v24 = vpop.f32.mrf.mxu0  ;;  %v1816_v29 = vadd.f32 %v1755_v3, %v5142_v50 }
 0x2bd   : > { %v3917_v8 = vpop.f32.mrf.mxu1  ;;  %5444 = vst [vmem:[#allocation37_spill] sm:$0xff] %v5208_v24 }
 0x2be   : > { %v5210_v43 = vpop.f32.mrf.mxu0  ;;  %v2022_v30 = vadd.f32 %v5109_v12, %v1816_v29 }
 0x2bf   : > { %v1768_v9 = vpop.f32.mrf.mxu1  ;;  %5445 = vst [vmem:[#allocation38_spill] sm:$0xff] %v5210_v43  ;;  %v1815_v43 = vadd.f32 %v1752_v45, %v5136_v57  ;;  %v2024_v45 = vadd.f32 %v5107_v44, %v1818_v41 }
 0x2c1   : > { %v3918_v27 = vpop.f32.mrf.mxu1 }
 0x2c3   : > { %v1771_v11 = vpop.f32.mrf.mxu1 }
 0x2c4   : > { %v1820_v44 = vadd.f32 %v1771_v11, %v5154_v55 }
 0x2c5   : > { %v5184_v60 = vpop.f32.mrf.mxu1 }
 0x2c7   : > { %v5188_v4 = vpop.f32.mrf.mxu1 }
 0x2c9   : > { %v5190_v46 = vpop.f32.mrf.mxu1 }
 0x2cb   : > { %v5194_v39 = vpop.f32.mrf.mxu1 }
 0x2cd   : > { %v3925_v47 = vpop.f32.mrf.mxu1 }
 0x2ce   : > { %v5198_v1 = vadd.f32 %v3925_v47, %v1394_v31  ;;  %v5212_v31 = vpop.f32.mrf.mxu0 }
 0x2cf   : > { %v1800_v0 = vpop.f32.mrf.mxu1  ;;  %5446 = vst [vmem:[#allocation39_spill] sm:$0xff] %v5212_v31 }
 0x2d0   : > { %5439 = vst [vmem:[#allocation32_spill] sm:$0xff] %v5198_v1  ;;  %v5200_v6 = vadd.f32 %v1800_v0, %v1392_v21  ;;  %v4073_v0 = vpop.f32.mrf.mxu0  ;;  %v1817_v1 = vadd.f32 %v3913_v34, %v5133_v40  ;;  %v1821_v34 = vadd.f32 %v3917_v8, %v5146_v52 }
 0x2d1   : > { %v5202_v19 = vpop.f32.mrf.mxu1 }
 0x2d2   : > { %5440 = vst [vmem:[#allocation33_spill] sm:$0xff] %v5200_v6  ;;  %5441 = vst [vmem:[#allocation34_spill] sm:$0xff] %v5202_v19  ;;  %v2851_v38 = vpop.f32.mrf.mxu0  ;;  %v2023_v16 = vadd.f32 %v5103_v36, %v1817_v1 }
 0x2d3   : > { %v5206_v26 = vpop.f32.mrf.mxu1 }
 0x2d4   : > { %5443 = vst [vmem:[#allocation36_spill] sm:$0xff] %v5206_v26  ;;  %v4074_v24 = vpop.f32.mrf.mxu0 }
 0x2d5   : > { %v3977_v33 = vpop.f32.mrf.mxu1 }
 0x2d6   : > { %v2854_v31 = vpop.f32.mrf.mxu0 }
 0x2d7   : > { %v2164_v18 = vpop.f32.mrf.mxu1 }
 0x2d8   : > { %v4077_v40 = vpop.f32.mrf.mxu0 }
 0x2d9   : > { %v3978_v20 = vpop.f32.mrf.mxu1 }
 0x2da   : > { %v2230_v36 = vadd.f32 %v3978_v20, %v2024_v45 }
 0x2db   : > { %v2167_v32 = vpop.f32.mrf.mxu1 }
 0x2dd   : > { %v3981_v48 = vpop.f32.mrf.mxu1 }
 0x2df   : > { %v2180_v47 = vpop.f32.mrf.mxu1 }
 0x2e1   : > { %v3982_v21 = vpop.f32.mrf.mxu1 }
 0x2e3   : > { %v2183_v6 = vpop.f32.mrf.mxu1 }
 0x2e5   : > { %v5214_v19 = vpop.f32.mrf.mxu1 }
 0x2e7   : > { %v5216_v35 = vpop.f32.mrf.mxu1 }
 0x2e8   : > { %5447 = vst [vmem:[#allocation40_spill] sm:$0xff] %v5216_v35  ;;  %v2229_v35 = vadd.f32 %v3977_v33, %v2023_v16  ;;  %v2867_v16 = vpop.f32.mrf.mxu0 }
 0x2e9   : > { %v5218_v26 = vpop.f32.mrf.mxu1 }
 0x2ea   : > { %5448 = vst [vmem:[#allocation41_spill] sm:$0xff] %v5218_v26  ;;  %v2021_v26 = vadd.f32 %v5105_v23, %v1815_v43  ;;  %v2532_v50 = vadd.f32 %v5150_v25, %v2229_v35  ;;  %v2228_v23 = vadd.f32 %v2167_v32, %v2022_v30  ;;  %v2027_v43 = vadd.f32 %v5111_v49, %v1821_v34  ;;  %v5252_v49 = vld [vmem:[%s5389_s4] ss:$0 sm:$0xff] }
 0x2eb   : > { %v5221_v42 = vpop.f32.mrf.mxu1  ;;  %v2533_v35 = vadd.f32 %v5162_v2, %v2230_v36  ;;  %v1825_v25 = vadd.f32 %v5184_v60, %v5158_v58  ;;  %v1826_v2 = vadd.f32 %v5190_v46, %v5164_v5 }
 0x2ec   : > { %v2227_v57 = vadd.f32 %v2164_v18, %v2021_v26  ;;  %v1822_v18 = vadd.f32 %v3918_v27, %v5152_v17  ;;  %v2233_v20 = vadd.f32 %v3981_v48, %v2027_v43  ;;  %v2026_v27 = vadd.f32 %v5117_v59, %v1820_v44  ;;  %v5453_v43 = vld [vmem:[#allocation27_spill] sm:$0xff] }
 0x2ed   : > { %v5224_v56 = vpop.f32.mrf.mxu1  ;;  %v2031_v33 = vadd.f32 %v5119_v53, %v1825_v25 }
 0x2ee   : > { %5449 = vst [vmem:[#allocation42_spill] sm:$0xff] %v5224_v56  ;;  %v1819_v56 = vadd.f32 %v1768_v9, %v5148_v37  ;;  %v2530_v52 = vadd.f32 %v5156_v51, %v2227_v57  ;;  %v4078_v51 = vpop.f32.mrf.mxu0  ;;  %v1823_v9 = vadd.f32 %v5188_v4, %v5160_v61  ;;  %v2028_v58 = vadd.f32 %v5115_v63, %v1822_v18 }
 0x2ef   : > { %v5228_v10 = vpop.f32.mrf.mxu1  ;;  %v5451_v36 = vld [vmem:[#allocation40_spill] sm:$0xff] }
 0x2f0   : > { %v2025_v41 = vadd.f32 %v5113_v54, %v1819_v56  ;;  %v2531_v54 = vadd.f32 %v5168_v13, %v2228_v23  ;;  %v2234_v26 = vadd.f32 %v3982_v21, %v2028_v58  ;;  %v2232_v13 = vadd.f32 %v2183_v6, %v2026_v27  ;;  %v5450_v21 = vld [vmem:[#allocation18_spill] sm:$0xff] }
 0x2f1   : > { %v5232_v28 = vpop.f32.mrf.mxu1  ;;  %v2029_v6 = vadd.f32 %v5121_v15, %v1823_v9  ;;  %v2032_v53 = vadd.f32 %v5450_v21, %v1826_v2  ;;  %v5457_v2 = vld [vmem:[#allocation29_spill] sm:$0xff] }
 0x2f2   : > { %v2231_v32 = vadd.f32 %v2180_v47, %v2025_v41  ;;  %v2870_v47 = vpop.f32.mrf.mxu0  ;;  %v5454_v41 = vld [vmem:[#allocation41_spill] sm:$0xff] }
 0x2f3   : > { %v5237_v62 = vpop.f32.mrf.mxu1  ;;  %v2235_v30 = vadd.f32 %v5451_v36, %v2029_v6  ;;  %v5461_v6 = vld [vmem:[#allocation31_spill] sm:$0xff] }
 0x2f4   : > { %v2534_v4 = vadd.f32 %v5176_v22, %v2231_v32 }
 0x2f5   : > { %v4041_v3 = vpop.f32.mrf.mxu1  ;;  %v2538_v58 = vadd.f32 %v5457_v2, %v2235_v30 }
 0x2f6   : > { %v2724_v1 = vadd.f32 %v4041_v3, %v2532_v50 }
 0x2f7   : > { %v2659_v37 = vpop.f32.mrf.mxu1 }
 0x2f8   : > { %v2916_v8 = vadd.f32 %v4073_v0, %v2724_v1  ;;  %v2722_v12 = vadd.f32 %v2659_v37, %v2530_v52  ;;  %v2238_v37 = vadd.f32 %v5454_v41, %v2032_v53 }
 0x2f9   : > { %v4042_v17 = vpop.f32.mrf.mxu1 }
 0x2fa   : > { %v2914_v55 = vadd.f32 %v2851_v38, %v2722_v12  ;;  %v2725_v29 = vadd.f32 %v4042_v17, %v2533_v35  ;;  %v2939_v60 = vadd.f32 %v5252_v49, %v2916_v8  ;;  %v2536_v38 = vadd.f32 %v5170_v14, %v2233_v20  ;;  %v5455_v8 = vld [vmem:[#allocation28_spill] sm:$0xff]  ;;  %v5456_v35 = vld [vmem:[#allocation19_spill] sm:$0xff] }
 0x2fb   : > { %v2662_v11 = vpop.f32.mrf.mxu1  ;;  %v2237_v14 = vadd.f32 %v5214_v19, %v2031_v33 }
 0x2fc   : > { %v2917_v56 = vadd.f32 %v4074_v24, %v2725_v29  ;;  %v2723_v48 = vadd.f32 %v2662_v11, %v2531_v54  ;;  %v2937_v5 = vadd.f32 %v5252_v49, %v2914_v55  ;;  %v1824_v24 = vadd.f32 %v5194_v39, %v5166_v7  ;;  %v4081_v39 = vpop.f32.mrf.mxu0 }
 0x2fd   : > { %v4045_v61 = vpop.f32.mrf.mxu1  ;;  %v2955_v34 = vmax.f32 %v2939_v60, 0.0  ;;  %v2535_v7 = vadd.f32 %v5453_v43, %v2232_v13  ;;  %v2540_v12 = vadd.f32 %v5455_v8, %v2237_v14 }
 0x2fe   : > { %v2940_v63 = vadd.f32 %v5252_v49, %v2917_v56  ;;  %v2915_v59 = vadd.f32 %v2854_v31, %v2723_v48  ;;  %v2728_v46 = vadd.f32 %v4045_v61, %v2536_v38  ;;  %v5452_v31 = vld [vmem:[#allocation26_spill] sm:$0xff]  ;;  %v2953_v19 = vmax.f32 %v2937_v5, 0.0 }
 0x2ff   : > { %v2675_v0 = vpop.f32.mrf.mxu1  ;;  %v2537_v3 = vadd.f32 %v5452_v31, %v2234_v26  ;;  %v2030_v25 = vadd.f32 %v5456_v35, %v1824_v24  ;;  %v5458_v26 = vld [vmem:[#allocation30_spill] sm:$0xff] }
 0x300   : > { %v2956_v22 = vmax.f32 %v2940_v63, 0.0  ;;  %v2938_v57 = vadd.f32 %v5252_v49, %v2915_v59  ;;  %v2726_v45 = vadd.f32 %v2675_v0, %v2534_v4  ;;  %v2920_v50 = vadd.f32 %v4077_v40, %v2728_v46  ;;  %v5459_v59 = vld [vmem:[#allocation32_spill] sm:$0xff] }
 0x301   : > { %v4046_v23 = vpop.f32.mrf.mxu1  ;;  %v2236_v27 = vadd.f32 %v5221_v42, %v2030_v25  ;;  %v5460_v46 = vld [vmem:[#allocation20_spill] sm:$0xff] }
 0x302   : > { %v3503_v1 = vpack.c.bf16 %v2956_v22, %v2955_v34  ;;  %v2954_v15 = vmax.f32 %v2938_v57, 0.0  ;;  %v2918_v52 = vadd.f32 %v2867_v16, %v2726_v45  ;;  %v2729_v18 = vadd.f32 %v4046_v23, %v2537_v3  ;;  %v2883_v16 = vpop.f32.mrf.mxu0  ;;  %v5462_v0 = vld [vmem:[#allocation24_spill] sm:$0xff]  ;;  %v5463_v34 = vld [vmem:[#allocation34_spill] sm:$0xff]  ;;  %v5464_v3 = vld [vmem:[#allocation25_spill] sm:$0xff] }
 0x303   : > { %v2678_v44 = vpop.f32.mrf.mxu1  ;;  %v2943_v32 = vadd.f32 %v5252_v49, %v2920_v50  ;;  %v2035_v42 = vadd.f32 %v5460_v46, %v5459_v59  ;;  %v2539_v21 = vadd.f32 %v5461_v6, %v2236_v27  ;;  %v1830_v22 = vadd.f32 %v5463_v34, %v5462_v0  ;;  %v5465_v23 = vld [vmem:[#allocation36_spill] sm:$0xff] }
 0x304   : > { %3549 = vst [vmem:[%s5278_s17 + $0x8] sm:$0xff] %v3503_v1   ;;  %v3498_v40 = vpack.c.bf16 %v2954_v15, %v2953_v19  ;;  %v2727_v20 = vadd.f32 %v2678_v44, %v2535_v7  ;;  %v2921_v17 = vadd.f32 %v4078_v51, %v2729_v18  ;;  %v2941_v29 = vadd.f32 %v5252_v49, %v2918_v52  ;;  %v4082_v4 = vpop.f32.mrf.mxu0  ;;  %v5466_v7 = vld [vmem:[#allocation42_spill] sm:$0xff]  ;;  %v5467_v19 = vld [vmem:[#allocation33_spill] sm:$0xff] }
 0x305   : > { %v4049_v55 = vpop.f32.mrf.mxu1  ;;  %v2541_v51 = vadd.f32 %v5458_v26, %v2238_v37  ;;  %v2959_v13 = vmax.f32 %v2943_v32, 0.0  ;;  %v1828_v43 = vadd.f32 %v5465_v23, %v5464_v3  ;;  %v5468_v1 = vld [vmem:[#allocation21_spill] sm:$0xff] }
 0x306   : > { %3499 = vst [vmem:[%s5278_s17] sm:$0xff] %v3498_v40   ;;  %v2919_v54 = vadd.f32 %v2870_v47, %v2727_v20  ;;  %v2732_v9 = vadd.f32 %v4049_v55, %v2540_v12  ;;  %v2944_v11 = vadd.f32 %v5252_v49, %v2921_v17  ;;  %v2957_v47 = vmax.f32 %v2941_v29, 0.0  ;;  %v2886_v31 = vpop.f32.mrf.mxu0  ;;  %v5469_v40 = vld [vmem:[#allocation22_spill] sm:$0xff]  ;;  %v5470_v17 = vld [vmem:[#allocation23_spill] sm:$0xff] }
 0x307   : > { %v2691_v60 = vpop.f32.mrf.mxu1  ;;  %v2033_v15 = vadd.f32 %v5468_v1, %v5467_v19  ;;  %v2036_v20 = vadd.f32 %v5469_v40, %v1830_v22  ;;  %v2034_v55 = vadd.f32 %v5470_v17, %v1828_v43  ;;  %v5471_v29 = vld [vmem:[#allocation35_spill] sm:$0xff] }
 0x308   : > { %v2942_v56 = vadd.f32 %v5252_v49, %v2919_v54  ;;  %v2924_v48 = vadd.f32 %v4081_v39, %v2732_v9  ;;  %v2730_v38 = vadd.f32 %v2691_v60, %v2538_v58  ;;  %v2960_v33 = vmax.f32 %v2944_v11, 0.0  ;;  %v5472_v11 = vld [vmem:[#allocation37_spill] sm:$0xff] }
 0x309   : > { %v4050_v61 = vpop.f32.mrf.mxu1  ;;  %v2241_v39 = vadd.f32 %v5466_v7, %v2035_v42  ;;  %v2239_v37 = vadd.f32 %v5228_v10, %v2033_v15  ;;  %v2242_v32 = vadd.f32 %v5232_v28, %v2036_v20  ;;  %v2240_v10 = vadd.f32 %v5237_v62, %v2034_v55 }
 0x30a   : > { %v2958_v5 = vmax.f32 %v2942_v56, 0.0  ;;  %v2733_v63 = vadd.f32 %v4050_v61, %v2541_v51  ;;  %v3513_v24 = vpack.c.bf16 %v2960_v33, %v2959_v13  ;;  %v2922_v14 = vadd.f32 %v2883_v16, %v2730_v38  ;;  %v5473_v38 = vld [vmem:[#allocation38_spill] sm:$0xff]  ;;  %v5474_v61 = vld [vmem:[#allocation39_spill] sm:$0xff] }
 0x30b   : > { %v2694_v53 = vpop.f32.mrf.mxu1  ;;  %v2947_v45 = vadd.f32 %v5252_v49, %v2924_v48  ;;  %v2544_v54 = vadd.f32 %v5471_v29, %v2241_v39  ;;  %v2542_v60 = vadd.f32 %v5472_v11, %v2239_v37  ;;  %v2545_v26 = vadd.f32 %v5473_v38, %v2242_v32 }
 0x30c   : > { %v3508_v57 = vpack.c.bf16 %v2958_v5, %v2957_v47  ;;  %v2925_v36 = vadd.f32 %v4082_v4, %v2733_v63  ;;  %3551 = vst [vmem:[%s5278_s17 + $0x18] sm:$0xff] %v3513_v24   ;;  %v2731_v30 = vadd.f32 %v2694_v53, %v2539_v21  ;;  %v2945_v18 = vadd.f32 %v5252_v49, %v2922_v14 }
 0x30d   : > { %v4053_v50 = vpop.f32.mrf.mxu1  ;;  %v2963_v8 = vmax.f32 %v2947_v45, 0.0  ;;  %v2543_v4 = vadd.f32 %v5474_v61, %v2240_v10 }
 0x30e   : > { %3550 = vst [vmem:[%s5278_s17 + $0x10] sm:$0xff] %v3508_v57   ;;  %v2948_v52 = vadd.f32 %v5252_v49, %v2925_v36  ;;  %v2923_v44 = vadd.f32 %v2886_v31, %v2731_v30  ;;  %v2961_v9 = vmax.f32 %v2945_v18, 0.0  ;;  %v2736_v27 = vadd.f32 %v4053_v50, %v2544_v54 }
 0x30f   : > { %v2707_v41 = vpop.f32.mrf.mxu1 }
 0x310   : > { %v2964_v12 = vmax.f32 %v2948_v52, 0.0  ;;  %v2946_v35 = vadd.f32 %v5252_v49, %v2923_v44  ;;  %v2734_v28 = vadd.f32 %v2707_v41, %v2542_v60 }
 0x311   : > { %v4054_v25 = vpop.f32.mrf.mxu1 }
 0x312   : > { %v3523_v16 = vpack.c.bf16 %v2964_v12, %v2963_v8  ;;  %v2962_v2 = vmax.f32 %v2946_v35, 0.0  ;;  %v2737_v33 = vadd.f32 %v4054_v25, %v2545_v26 }
 0x313   : > { %v2710_v58 = vpop.f32.mrf.mxu1 }
 0x314   : > { %3553 = vst [vmem:[%s5278_s17 + $0x28] sm:$0xff] %v3523_v16   ;;  %v3518_v56 = vpack.c.bf16 %v2962_v2, %v2961_v9  ;;  %v2735_v62 = vadd.f32 %v2710_v58, %v2543_v4 }
 0x315   : > { %v4085_v48 = vpop.f32.mrf.mxu1 }
 0x316   : > { %v2928_v51 = vadd.f32 %v4085_v48, %v2736_v27  ;;  %3552 = vst [vmem:[%s5278_s17 + $0x20] sm:$0xff] %v3518_v56  }
 0x317   : > { %v2899_v13 = vpop.f32.mrf.mxu1 }
 0x318   : > { %v2926_v47 = vadd.f32 %v2899_v13, %v2734_v28  ;;  %v2951_v63 = vadd.f32 %v5252_v49, %v2928_v51 }
 0x319   : > { %v4086_v5 = vpop.f32.mrf.mxu1 }
 0x31a   : > { %v2929_v59 = vadd.f32 %v4086_v5, %v2737_v33  ;;  %v2949_v42 = vadd.f32 %v5252_v49, %v2926_v47  ;;  %v2967_v6 = vmax.f32 %v2951_v63, 0.0 }
 0x31b   : > { %v2902_v46 = vpop.f32.mrf.mxu1 }
 0x31c   : > { %v2952_v24 = vadd.f32 %v5252_v49, %v2929_v59  ;;  %v2927_v14 = vadd.f32 %v2902_v46, %v2735_v62  ;;  %v2965_v0 = vmax.f32 %v2949_v42, 0.0 }
 0x31e   : > { %v2968_v21 = vmax.f32 %v2952_v24, 0.0  ;;  %v2950_v53 = vadd.f32 %v5252_v49, %v2927_v14 }
 0x320   : > { %v3533_v34 = vpack.c.bf16 %v2968_v21, %v2967_v6  ;;  %v2966_v22 = vmax.f32 %v2950_v53, 0.0 }
 0x322   : > { %3555 = vst [vmem:[%s5278_s17 + $0x38] sm:$0xff] %v3533_v34   ;;  %v3528_v57 = vpack.c.bf16 %v2966_v22, %v2965_v0 }
 0x324   : > { %3554 = vst [vmem:[%s5278_s17 + $0x30] sm:$0xff] %v3528_v57  }
 0x325   : > { %4410 = shalt.err (!%p4407_p12)
}
 0x326   : > { %s4411_s11 = scalar_lea.hbm %s5331_s16, 1024  ;;  %s4415_s30 = scalar_lea.hbm %s5475_s1, 4096 }
 0x327   : > { %p4412_p13 = scmp.ne.s32.totalorder %s5331_s16, %s4411_s11  ;;  %p4416_p5 = scmp.lt.s32.totalorder %s5331_s16, %s5475_s1 }
 0x328   : > { %p4417_p7 = scmp.lt.s32.totalorder %s4415_s30, %s4411_s11 }
 0x329   : > { %p4413_p3 = pnand %p4412_p13, %p4656_p0 }
 0x32a   : > { %p4418_p1 = por %p4417_p7, %p4416_p5 }
 0x32b   : > { %p4414_p10 = pneg %p4413_p3 }
 0x32d   : > { %p4419_p4 = pnand %p4418_p1, %p4414_p10 }
 0x32f   : > { %4422 = shalt.err (!%p4419_p4)
}
 0x330   : > { %s4507_s17 = smov 64   ;;  %s4508_s27 = smov 4  }
 0x331   : > { %4117 = dma.vmem_to_hbm [thread:$0]  (%p4656_p0), %s5325_s21, 1024, %s5331_s16, %s3050_s26, %s4507_s17, %s4507_s17, %s4508_s27  }
 0x332 PF: > { %s5476_s8 = sld [smem:[#allocation14_spill]] }
 0x333   : > { %s5477_s29 = sld [smem:[#allocation13_spill]] }
 0x338   : > { %p4139_p8 = scmp.ge.s32.totalorder %s5476_s8, 2 }
 0x339   : > { %s3080_s13 = sand.u32 1, %s5477_s29  }
 0x33a   : > { %p4131_p9 = pnand %p4139_p8, %p4598_p6  ;;  %s3081_s14 = scalar_lea.sflag [#allocation5], %s3080_s13 }
 0x33c   : > { %p4132_p2 = pneg %p4131_p9 }
 0x33e   : > { %4464 = dma.done.wait (%p4132_p2), %s3081_s14, 1024  }
 0x33f   : > { %4466 = vsyncadd (%p4132_p2), %s3081_s14, 4294966272  ;;  %s22_s25 = sadd.s32 1, %s5476_s8   ;;  %s5479_s12 = sld [smem:[#allocation16_spill]] }
 0x340   : > { %p19_p11 = scmp.ge.s32.totalorder %s22_s25, 6   ;;  %s5480_s16 = sld [smem:[#allocation17_spill]] }
 0x341   : > { %s5481_s18 = smov %s4473_s19  ;;  %s5482_s19 = smov %s4477_s20 }
 0x342   : > { %s5483_s20 = smov %s4675_s9  ;;  %s5484_s21 = smov %s4489_s23 }
 0x343   : > { %s5485_s22 = smov %s4493_s24  ;;  %21 = sbr.rel (!%p19_p11) target bundleno = 12 (0xc), region = 101 }
 0x345   : > { %s5486_s23 = smov %s5479_s12 }
 0x346   : > { %s5487_s24 = smov %s5480_s16 }
 0x348   :  { %3086 = vsyncpa [#allocation4], 1 }
 0x349   :  { %3088 = vsyncpa [#allocation4 + $0x1], 1 }
 0x34a   :  { %3089 = vsyncpa [#allocation7], 1 }
 0x34b   :  { %3090 = vsyncpa [#allocation5], 1 }
 0x34c   :  { %3092 = vsyncpa [#allocation5 + $0x1], 1 }

</bundles_post_ra>
